<compile_context>
chip_gen: v5e
topology: v5e:2x2
jax: 0.10.0
libtpu: 0.0.40
codegen_flags: <defaults>
</compile_context>

<pallas_src>
import functools
from collections import namedtuple

import jax
import jax.numpy as jnp
from jax.experimental import pallas as pl
from jax.experimental.pallas import tpu as pltpu

LossTuple = namedtuple(
    "LossTuple",
    ["rpn_loc_loss", "rpn_cls_loss", "roi_loc_loss", "roi_cls_loss", "total_loss"],
)

# ----------------------------- configuration --------------------------------
C_IN, H, W = 4, 16, 16          # image channels / spatial size (W must be 2**k)
HW = H * W                      # 256 spatial positions (2 lane tiles)
FEAT = 16                       # extractor output channels
MID = 16                        # RPN mid channels
A = 3                           # anchors per location
ANCHOR_SIZES = (4.0, 8.0, 12.0)
N_CLASS = 5                     # 4 foreground classes + background
N_PRE_ROI = 64                  # rois taken from RPN (before target sampling)
N_SAMPLE_ROI = 32               # rois fed into the roi head
POOL = 2                        # roi pooling grid
HIDDEN = 32                     # roi head fc width
RPN_SIGMA = 3.0
ROI_SIGMA = 1.0
PADL = 128                      # lane padding on each side of feat inside kernel 1
LOC_MEAN = jnp.array([0.0, 0.0, 0.0, 0.0], jnp.float32)
LOC_STD = jnp.array([0.1, 0.1, 0.2, 0.2], jnp.float32)

# static layout asserts (lane-dense reshapes below rely on these)
assert W & (W - 1) == 0, "W must be a power of two (x-coordinate mask uses &)"
assert HW % 128 == 0, "spatial positions must fill whole lane tiles"
assert (HW * A) % 128 == 0, "RPN anchor count must be a multiple of 128"
assert PADL >= W + 1, "lane padding must cover the largest conv shift"


# ----------------------------- Pallas kernels --------------------------------
def _rpn_chain_kernel(xcols_ref, w_ext_ref, b_ext_ref, w_rpn_ref, b_rpn_ref,
                      w_head_ref, b_head_ref, out_ref, feat_pad_ref):
    """Extractor 3x3 conv + RPN 3x3 conv + fused 1x1 loc||score head.

    Spatial-on-lanes layout: every tensor is [channels, HW] with HW = 256 lanes,
    so all stores are lane-dense and the MXU N dimension is full.
    """
    # extractor 3x3 conv (im2col of the raw image done in the wrapper) + ReLU
    feat = jnp.dot(w_ext_ref[...], xcols_ref[...],
                   preferred_element_type=jnp.float32) + b_ext_ref[...]
    feat = jnp.maximum(feat, 0.0)                            # [FEAT, HW] f32
    out_ref[pl.ds(0, FEAT), :] = feat

    # lane-padded copy of feat for the nine spatial taps; only the pad regions
    # are zeroed (the centre is overwritten immediately).
    feat_pad_ref[:, pl.ds(0, PADL)] = jnp.zeros((FEAT, PADL), jnp.float32)
    feat_pad_ref[:, pl.ds(PADL + HW, PADL)] = jnp.zeros((FEAT, PADL), jnp.float32)
    feat_pad_ref[:, pl.ds(PADL, HW)] = feat

    col_ids = jax.lax.broadcasted_iota(jnp.int32, (FEAT, HW), 1)
    xcoord = jnp.bitwise_and(col_ids, W - 1)                 # x coordinate per lane

    # assemble the 9 shifted / wrap-masked taps and do ONE K = 9*FEAT matmul.
    taps = []
    for dy in (-1, 0, 1):
        for dx in (-1, 0, 1):
            s = dy * W + dx
            tap = feat_pad_ref[:, pl.ds(PADL + s, HW)]        # [FEAT, HW]
            if dx == -1:                 # no left neighbour at x == 0
                tap = jnp.where(xcoord >= 1, tap, jnp.zeros_like(tap))
            elif dx == 1:                # no right neighbour at x == W-1
                tap = jnp.where(xcoord <= W - 2, tap, jnp.zeros_like(tap))
            taps.append(tap)
    tap_cat = jnp.concatenate(taps, axis=0)                   # [9*FEAT, HW]

    mid = jnp.dot(w_rpn_ref[...], tap_cat,
                  preferred_element_type=jnp.float32) + b_rpn_ref[...]
    mid = jnp.maximum(mid, 0.0)                               # [MID, HW]

    # fused 1x1 loc||score head -> rows [FEAT, FEAT+A*6) of the output slab
    out_ref[pl.ds(FEAT, A * 6), :] = (
        jnp.dot(w_head_ref[...], mid, preferred_element_type=jnp.float32)
        + b_head_ref[...])


def rpn_chain(x_chw, params):
    xcols = im2col_3x3(x_chw)                                 # [C_IN*9, HW] f32
    slab = pl.pallas_call(
        _rpn_chain_kernel,
        out_shape=jax.ShapeDtypeStruct((FEAT + A * 6, HW), jnp.float32),
        scratch_shapes=[pltpu.VMEM((FEAT, HW + 2 * PADL), jnp.float32)],
        cost_estimate=pl.CostEstimate(flops=1_700_000, transcendentals=0,
                                      bytes_accessed=80_000),
    )(xcols,
      params["w_ext_t"], params["b_ext"].reshape(FEAT, 1),
      params["w_rpn_t"], params["b_rpn"].reshape(MID, 1),
      params["w_head_t"], params["b_head"].reshape(A * 6, 1))
    return slab[:FEAT], slab[FEAT:]                           # feat_T, head_T


def _roi_losses_kernel(rpn_pred_ref, rpn_gt_ref, rpn_x0_ref, rpn_x1_ref,
                       rpn_lab_ref, pooled_ref, w_fc_ref, b_fc_ref,
                       w_cls_ref, b_cls_ref, roi_gt_ref, roi_lab_ref, out_ref):
    """ROI head (fc + fused cls head), class-indexed loc gather and all 4 losses."""
    # --- ROI head, fully resident in VMEM ---
    h = jnp.dot(pooled_ref[...], w_fc_ref[...],
                preferred_element_type=jnp.float32) + b_fc_ref[...]
    h = jnp.maximum(h, 0.0)                                    # [R, HIDDEN]
    head = jnp.dot(h, w_cls_ref[...],
                   preferred_element_type=jnp.float32) + b_cls_ref[...]  # [R, 25]
    cls_loc = head[:, : N_CLASS * 4]                           # [R, 20]
    roi_score = head[:, N_CLASS * 4:]                          # [R, N_CLASS]

    roi_lab = roi_lab_ref[...]                                 # [R, 1] int32
    # per-roi loc for the assigned class (mask + fold, no reshape/gather)
    cols20 = jax.lax.broadcasted_iota(jnp.int32, (N_SAMPLE_ROI, N_CLASS * 4), 1)
    lab4 = roi_lab * 4
    sel = jnp.where((cols20 >= lab4) & (cols20 < lab4 + 4), cls_loc, 0.0)
    roi_loc = (sel[:, 0:4] + sel[:, 4:8] + sel[:, 8:12]
               + sel[:, 12:16] + sel[:, 16:20])                # [R, 4]

    def smooth_l1_sum(diff, sigma2):
        ad = jnp.abs(diff)
        flag = (ad < (1.0 / sigma2)).astype(jnp.float32)
        return jnp.sum(flag * (0.5 * sigma2) * diff * diff
                       + (1.0 - flag) * (ad - 0.5 / sigma2))

    # --- RPN losses (masks derived in-kernel from the raw int labels) ---
    lab = rpn_lab_ref[...]                                     # [6, 128] int32
    pos = (lab > 0).astype(jnp.float32)
    valid = (lab >= 0).astype(jnp.float32)
    n_valid = jnp.maximum(jnp.sum(valid), 1.0)

    # loc tensors are component-major: row c*6 + r holds component c of anchors
    # r*128 .. r*128+127, so the [6,128] mask tiles cleanly to [24,128].
    pos4 = jnp.concatenate([pos, pos, pos, pos], axis=0)       # [24, 128]
    rpn_diff = pos4 * (rpn_pred_ref[...] - rpn_gt_ref[...])
    out_ref[0, 0] = smooth_l1_sum(rpn_diff, RPN_SIGMA * RPN_SIGMA) / n_valid

    # 2-way cross entropy with ignore_index = -1
    x0 = rpn_x0_ref[...]
    x1 = rpn_x1_ref[...]
    m = jnp.maximum(x0, x1)
    lse = m + jnp.log(jnp.exp(x0 - m) + jnp.exp(x1 - m))
    tgt = jnp.where(lab == 1, x1, x0)
    out_ref[0, 1] = jnp.sum((lse - tgt) * valid) / n_valid

    # --- ROI losses ---
    roi_pos = (roi_lab > 0).astype(jnp.float32)                # [R, 1]
    roi_valid = (roi_lab >= 0).astype(jnp.float32)
    roi_diff = roi_pos * (roi_loc - roi_gt_ref[...])
    roi_norm = jnp.maximum(jnp.sum(roi_valid), 1.0)
    out_ref[0, 2] = smooth_l1_sum(roi_diff, ROI_SIGMA * ROI_SIGMA) / roi_norm

    # softmax cross entropy over N_CLASS classes (ignore_index = -100)
    s = roi_score
    sm = jnp.max(s, axis=-1, keepdims=True)
    slse = sm + jnp.log(jnp.sum(jnp.exp(s - sm), axis=-1, keepdims=True))
    cols5 = jax.lax.broadcasted_iota(jnp.int32, s.shape, 1)
    tl = jnp.sum(jnp.where(cols5 == roi_lab, s, 0.0), axis=-1, keepdims=True)
    ce_valid = (roi_lab != -100).astype(jnp.float32)
    out_ref[0, 3] = jnp.sum((slse - tl) * ce_valid) / jnp.maximum(jnp.sum(ce_valid), 1.0)


def fused_roi_head_and_losses(pooled, params, rpn_locs, rpn_scores,
                              gt_rpn_loc, gt_rpn_label, gt_roi_loc, gt_roi_label):
    n_anchor = rpn_locs.shape[0]
    nl = n_anchor // 128                                       # 6 for 16x16x3
    # component-major lane-dense layouts: row c*nl + r, lanes = anchors r*128+j
    rpn_pred = rpn_locs.T.reshape(4 * nl, 128).astype(jnp.float32)
    rpn_gt = gt_rpn_loc.T.reshape(4 * nl, 128).astype(jnp.float32)
    rpn_x0 = rpn_scores[:, 0].reshape(nl, 128).astype(jnp.float32)
    rpn_x1 = rpn_scores[:, 1].reshape(nl, 128).astype(jnp.float32)
    rpn_lab = gt_rpn_label.reshape(nl, 128).astype(jnp.int32)

    loss_vec = pl.pallas_call(
        _roi_losses_kernel,
        out_shape=jax.ShapeDtypeStruct((1, 4), jnp.float32),
        out_specs=pl.BlockSpec(memory_space=pltpu.MemorySpace.SMEM),
        cost_estimate=pl.CostEstimate(flops=300_000, transcendentals=2_000,
                                      bytes_accessed=40_000),
    )(rpn_pred, rpn_gt, rpn_x0, rpn_x1, rpn_lab,
      pooled.astype(jnp.float32),
      params["w_fc"], params["b_fc"].reshape(1, HIDDEN),
      params["w_cls"], params["b_cls"].reshape(1, N_CLASS * 5),
      gt_roi_loc.astype(jnp.float32),
      gt_roi_label.reshape(N_SAMPLE_ROI, 1).astype(jnp.int32))
    return loss_vec[0, 0], loss_vec[0, 1], loss_vec[0, 2], loss_vec[0, 3]


# ----------------------------- plain-JAX glue --------------------------------
def im2col_3x3(x_chw):
    """[C, H, W] -> [C*9, H*W] patches for a 3x3 / stride-1 / pad-1 conv."""
    C, Hh, Ww = x_chw.shape
    xp = jnp.pad(x_chw, ((0, 0), (1, 1), (1, 1)))
    cols = []
    for dy in range(3):
        for dx in range(3):
            cols.append(xp[:, dy:dy + Hh, dx:dx + Ww])
    patches = jnp.stack(cols, axis=1)                 # [C, 9, H, W]
    return patches.reshape(C * 9, Hh * Ww)            # rows indexed c*9 + tap


def generate_anchors(Hh, Ww):
    ys, xs = jnp.meshgrid(
        jnp.arange(Hh, dtype=jnp.float32) + 0.5,
        jnp.arange(Ww, dtype=jnp.float32) + 0.5,
        indexing="ij",
    )
    cy = ys.reshape(-1, 1)
    cx = xs.reshape(-1, 1)
    half = jnp.array(ANCHOR_SIZES, jnp.float32)[None, :] / 2.0
    y1, x1, y2, x2 = cy - half, cx - half, cy + half, cx + half
    return jnp.stack([y1, x1, y2, x2], axis=-1).reshape(-1, 4)   # [H*W*A, 4]


def bbox_iou(a, b):
    tl = jnp.maximum(a[:, None, :2], b[None, :, :2])
    br = jnp.minimum(a[:, None, 2:], b[None, :, 2:])
    wh = jnp.maximum(br - tl, 0.0)
    inter = wh[..., 0] * wh[..., 1]
    area_a = jnp.prod(a[:, 2:] - a[:, :2], axis=1)
    area_b = jnp.prod(b[:, 2:] - b[:, :2], axis=1)
    return inter / (area_a[:, None] + area_b[None, :] - inter + 1e-8)


def bbox2loc(src, dst):
    eps = 1e-6
    h = jnp.maximum(src[:, 2] - src[:, 0], eps)
    w = jnp.maximum(src[:, 3] - src[:, 1], eps)
    cy = src[:, 0] + 0.5 * h
    cx = src[:, 1] + 0.5 * w
    gh = jnp.maximum(dst[:, 2] - dst[:, 0], eps)
    gw = jnp.maximum(dst[:, 3] - dst[:, 1], eps)
    gcy = dst[:, 0] + 0.5 * gh
    gcx = dst[:, 1] + 0.5 * gw
    return jnp.stack(
        [(gcy - cy) / h, (gcx - cx) / w, jnp.log(gh / h), jnp.log(gw / w)], axis=1
    )


def anchor_target(bbox, anchor, Hh, Ww):
    # TODO(synk): random 256-anchor subsampling and per-gt "best anchor" positives
    # of AnchorTargetCreator are not reproduced (deterministic thresholding only).
    inside = (
        (anchor[:, 0] >= 0)
        & (anchor[:, 1] >= 0)
        & (anchor[:, 2] <= Hh)
        & (anchor[:, 3] <= Ww)
    )
    ious = bbox_iou(anchor, bbox)
    max_iou = ious.max(axis=1)
    argmax = ious.argmax(axis=1)
    label = jnp.full((anchor.shape[0],), -1, jnp.int32)
    label = jnp.where(max_iou < 0.3, 0, label)
    label = jnp.where(max_iou >= 0.7, 1, label)
    label = jnp.where(inside, label, -1).astype(jnp.int32)
    gt_loc = bbox2loc(anchor, bbox[argmax])
    return gt_loc, label


def proposal_target(roi, bbox, label):
    # TODO(synk): ProposalTargetCreator's random fg/bg subsampling replaced with a
    # deterministic top-IoU selection of N_SAMPLE_ROI rois.
    roi = jnp.concatenate([roi, bbox], axis=0)
    ious = bbox_iou(roi, bbox)
    gt_assign = ious.argmax(axis=1)
    max_iou = ious.max(axis=1)
    roi_label = jnp.where(max_iou >= 0.5, label[gt_assign] + 1, 0).astype(jnp.int32)
    _, keep = jax.lax.top_k(max_iou, N_SAMPLE_ROI)
    sample_roi = roi[keep]
    gt_roi_label = roi_label[keep]
    gt_roi_loc = bbox2loc(sample_roi, bbox[gt_assign[keep]])
    gt_roi_loc = (gt_roi_loc - LOC_MEAN[None, :]) / LOC_STD[None, :]
    return sample_roi, gt_roi_loc, gt_roi_label


def roi_pool(feat, rois, pool):
    """Simplified ROI pooling: nearest-sample a pool x pool grid per roi."""
    # TODO(synk): could be moved in-kernel via PrefetchScalarGridSpec indices.
    F_, Hh, Ww = feat.shape
    y1, x1, y2, x2 = rois[:, 0], rois[:, 1], rois[:, 2], rois[:, 3]
    gy = (jnp.arange(pool, dtype=jnp.float32) + 0.5) / pool
    ys = y1[:, None] + gy[None, :] * (y2 - y1)[:, None]
    xs = x1[:, None] + gy[None, :] * (x2 - x1)[:, None]
    yi = jnp.clip(jnp.floor(ys).astype(jnp.int32), 0, Hh - 1)
    xi = jnp.clip(jnp.floor(xs).astype(jnp.int32), 0, Ww - 1)
    g = feat[:, yi[:, :, None], xi[:, None, :]]        # [F, R, pool, pool]
    g = jnp.transpose(g, (1, 0, 2, 3))                 # [R, F, pool, pool]
    return g.reshape(g.shape[0], -1)


# ----------------------------- model / forward -------------------------------
def init_params(key):
    ks = jax.random.split(key, 5)

    def wgt(k, shape, scale=0.1):
        return scale * jax.random.normal(k, shape, jnp.float32)

    return dict(
        # extractor 3x3 conv, transposed layout [FEAT, C_IN*9] (cols = c*9 + tap)
        w_ext_t=wgt(ks[0], (FEAT, C_IN * 9)), b_ext=jnp.zeros((FEAT,), jnp.float32),
        # RPN 3x3 conv, transposed layout [MID, 9*FEAT] (cols = tap*FEAT + c)
        w_rpn_t=wgt(ks[1], (MID, 9 * FEAT)), b_rpn=jnp.zeros((MID,), jnp.float32),
        # fused RPN head, transposed layout: rows [0:A*4] = loc, [A*4:A*6] = score
        w_head_t=wgt(ks[2], (A * 6, MID), 0.01),
        b_head=jnp.zeros((A * 6,), jnp.float32),
        # ROI head fc + fused cls head: columns [0:N_CLASS*4] = loc, rest = score
        w_fc=wgt(ks[3], (FEAT * POOL * POOL, HIDDEN)),
        b_fc=jnp.zeros((HIDDEN,), jnp.float32),
        w_cls=wgt(ks[4], (HIDDEN, N_CLASS * 5), 0.01),
        b_cls=jnp.zeros((N_CLASS * 5,), jnp.float32),
    )


def forward(params, images, bboxes, labels, scale):
    if bboxes.shape[0] != 1:
        raise RuntimeError("batch_size must be 1!!!")
    _, _, Hh, Ww = images.shape
    assert Hh == H and Ww == W, "kernel is specialized to the configured H/W"
    x = images[0]                                               # [C, H, W]

    # fused extractor + RPN conv + RPN heads: one Pallas kernel, lane-dense slab
    feat_t, head_t = rpn_chain(x, params)                       # [16,256], [18,256]
    feat = feat_t.reshape(FEAT, Hh, Ww)                         # no transpose needed
    rpn_locs = head_t[: A * 4].T.reshape(-1, 4)                 # [HW*A, 4]
    rpn_scores = head_t[A * 4:].T.reshape(-1, 2)                # [HW*A, 2]
    anchor = generate_anchors(Hh, Ww)

    # TODO(synk): ProposalCreator (loc2bbox decode + NMS, uses `scale` for
    # min-size filtering) has no clean Pallas equivalent; rois = top-score anchors.
    fg = jax.nn.softmax(rpn_scores, axis=-1)[:, 1]
    _, top = jax.lax.top_k(fg, N_PRE_ROI)
    bound = jnp.array([Hh, Ww, Hh, Ww], jnp.float32)
    rois = jnp.clip(anchor[top], 0.0, bound)

    bbox = bboxes[0]
    label = labels[0]

    # ProposalTargetCreator (deterministic)
    sample_roi, gt_roi_loc, gt_roi_label = proposal_target(rois, bbox, label)

    # RPN targets
    gt_rpn_loc, gt_rpn_label = anchor_target(bbox, anchor, Hh, Ww)

    # ROI pooling (glue) + one fused Pallas kernel: roi head + all four losses
    pooled = roi_pool(feat, sample_roi, POOL)                   # [32, 64]
    rpn_loc_loss, rpn_cls_loss, roi_loc_loss, roi_cls_loss = fused_roi_head_and_losses(
        pooled, params, rpn_locs, rpn_scores,
        gt_rpn_loc, gt_rpn_label, gt_roi_loc, gt_roi_label)

    total_loss = rpn_cls_loss + rpn_loc_loss + roi_cls_loss + roi_loc_loss
    return LossTuple(rpn_loc_loss, rpn_cls_loss, roi_loc_loss, roi_cls_loss, total_loss)


# TODO(synk): optimizer step / backward (train_one_image) and checkpoint
# save/load are training-loop machinery with no Pallas equivalent.

if __name__ == "__main__":
    key = jax.random.PRNGKey(0)
    k_img, k_par = jax.random.split(key)
    images = jax.random.normal(k_img, (1, C_IN, H, W), jnp.float32)
    bboxes = jnp.array(
        [[[2.0, 2.0, 10.0, 9.0], [5.0, 6.0, 14.0, 15.0], [1.0, 8.0, 7.0, 15.0]]],
        jnp.float32,
    )
    labels = jnp.array([[0, 1, 2]], jnp.int32)
    params = init_params(k_par)

    loss_fn = jax.jit(forward, static_argnames=("scale",))
    losses = loss_fn(params, images, bboxes, labels, scale=1.0)
    jax.block_until_ready(losses.total_loss)
    assert bool(jnp.isfinite(losses.total_loss)), "loss is not finite"
    print("KERNEL_OK")
</pallas_src>

<mosaic_0001>
module attributes {stable_mosaic.version = 11 : i64} {
  func.func @_rpn_chain_kernel(%arg0: memref<36x256xf32, #tpu.memory_space<vmem>>, %arg1: memref<16x36xf32, #tpu.memory_space<vmem>>, %arg2: memref<16x1xf32, #tpu.memory_space<vmem>>, %arg3: memref<16x144xf32, #tpu.memory_space<vmem>>, %arg4: memref<16x1xf32, #tpu.memory_space<vmem>>, %arg5: memref<18x16xf32, #tpu.memory_space<vmem>>, %arg6: memref<18x1xf32, #tpu.memory_space<vmem>>, %arg7: memref<34x256xf32, #tpu.memory_space<vmem>>, %arg8: memref<16x512xf32, #tpu.memory_space<vmem>>) attributes {dimension_semantics = [], scalar_prefetch = 0 : i64, scratch_operands = 1 : i64, tpu.core_type = #tpu.core_type<tc>} {
    %c0 = arith.constant 0 : index
    %c0_0 = arith.constant 0 : index
    %0 = vector.load %arg1[%c0, %c0_0] : memref<16x36xf32, #tpu.memory_space<vmem>>, vector<16x36xf32>
    %c0_1 = arith.constant 0 : index
    %c0_2 = arith.constant 0 : index
    %1 = vector.load %arg0[%c0_1, %c0_2] : memref<36x256xf32, #tpu.memory_space<vmem>>, vector<36x256xf32>
    %cst = arith.constant dense<0.000000e+00> : vector<16x256xf32>
    %2 = tpu.matmul %0, %1, %cst {dimension_numbers = #tpu.dot_dimension_numbers<[1], [0], [0], [1], [0, 0, 1, 1], [], []>} : vector<16x36xf32>, vector<36x256xf32>, vector<16x256xf32> -> vector<16x256xf32>
    %c0_3 = arith.constant 0 : index
    %c0_4 = arith.constant 0 : index
    %3 = vector.load %arg2[%c0_3, %c0_4] : memref<16x1xf32, #tpu.memory_space<vmem>>, vector<16x1xf32>
    %4 = vector.broadcast %3 : vector<16x1xf32> to vector<16x256xf32>
    %5 = arith.addf %2, %4 : vector<16x256xf32>
    %cst_5 = arith.constant 0.000000e+00 : f32
    %6 = vector.broadcast %cst_5 : f32 to vector<16x256xf32>
    %7 = arith.maximumf %5, %6 : vector<16x256xf32>
    %c0_6 = arith.constant 0 : index
    %c0_7 = arith.constant 0 : index
    %8 = vector.load %arg7[%c0_6, %c0_7] : memref<34x256xf32, #tpu.memory_space<vmem>>, vector<16x256xf32>
    tpu.vector_store %arg7[%c0_6, %c0_7], %7 {strides = array<i32>} : memref<34x256xf32, #tpu.memory_space<vmem>>, vector<16x256xf32>,
    %cst_8 = arith.constant 0.000000e+00 : f32
    %9 = vector.broadcast %cst_8 : f32 to vector<16x128xf32>
    %c0_9 = arith.constant 0 : index
    %c0_10 = arith.constant 0 : index
    %10 = vector.load %arg8[%c0_9, %c0_10] : memref<16x512xf32, #tpu.memory_space<vmem>>, vector<16x128xf32>
    tpu.vector_store %arg8[%c0_9, %c0_10], %9 {strides = array<i32>} : memref<16x512xf32, #tpu.memory_space<vmem>>, vector<16x128xf32>,
    %cst_11 = arith.constant 0.000000e+00 : f32
    %11 = vector.broadcast %cst_11 : f32 to vector<16x128xf32>
    %c0_12 = arith.constant 0 : index
    %c384 = arith.constant 384 : index
    %12 = vector.load %arg8[%c0_12, %c384] : memref<16x512xf32, #tpu.memory_space<vmem>>, vector<16x128xf32>
    tpu.vector_store %arg8[%c0_12, %c384], %11 {strides = array<i32>} : memref<16x512xf32, #tpu.memory_space<vmem>>, vector<16x128xf32>,
    %c0_13 = arith.constant 0 : index
    %c128 = arith.constant 128 : index
    %13 = vector.load %arg8[%c0_13, %c128] : memref<16x512xf32, #tpu.memory_space<vmem>>, vector<16x256xf32>
    tpu.vector_store %arg8[%c0_13, %c128], %7 {strides = array<i32>} : memref<16x512xf32, #tpu.memory_space<vmem>>, vector<16x256xf32>,
    %14 = tpu.iota {dimensions = array<i32: 1>} : vector<16x256xi32>
    %c15_i32 = arith.constant 15 : i32
    %15 = vector.broadcast %c15_i32 : i32 to vector<16x256xi32>
    %16 = arith.andi %14, %15 : vector<16x256xi32>
    %c0_14 = arith.constant 0 : index
    %c111 = arith.constant 111 : index
    %17 = vector.load %arg8[%c0_14, %c111] : memref<16x512xf32, #tpu.memory_space<vmem>>, vector<16x256xf32>
    %c1_i32 = arith.constant 1 : i32
    %18 = vector.broadcast %c1_i32 : i32 to vector<16x256xi32>
    %19 = arith.cmpi sge, %16, %18 : vector<16x256xi32>
    %cst_15 = arith.constant 0.000000e+00 : f32
    %20 = vector.broadcast %cst_15 : f32 to vector<16x256xf32>
    %21 = arith.select %19, %17, %20 : vector<16x256xi1>, vector<16x256xf32>
    %c0_16 = arith.constant 0 : index
    %c112 = arith.constant 112 : index
    %22 = vector.load %arg8[%c0_16, %c112] : memref<16x512xf32, #tpu.memory_space<vmem>>, vector<16x256xf32>
    %c0_17 = arith.constant 0 : index
    %c113 = arith.constant 113 : index
    %23 = vector.load %arg8[%c0_17, %c113] : memref<16x512xf32, #tpu.memory_space<vmem>>, vector<16x256xf32>
    %c14_i32 = arith.constant 14 : i32
    %24 = vector.broadcast %c14_i32 : i32 to vector<16x256xi32>
    %25 = arith.cmpi sle, %16, %24 : vector<16x256xi32>
    %cst_18 = arith.constant 0.000000e+00 : f32
    %26 = vector.broadcast %cst_18 : f32 to vector<16x256xf32>
    %27 = arith.select %25, %23, %26 : vector<16x256xi1>, vector<16x256xf32>
    %c0_19 = arith.constant 0 : index
    %c127 = arith.constant 127 : index
    %28 = vector.load %arg8[%c0_19, %c127] : memref<16x512xf32, #tpu.memory_space<vmem>>, vector<16x256xf32>
    %c1_i32_20 = arith.constant 1 : i32
    %29 = vector.broadcast %c1_i32_20 : i32 to vector<16x256xi32>
    %30 = arith.cmpi sge, %16, %29 : vector<16x256xi32>
    %cst_21 = arith.constant 0.000000e+00 : f32
    %31 = vector.broadcast %cst_21 : f32 to vector<16x256xf32>
    %32 = arith.select %30, %28, %31 : vector<16x256xi1>, vector<16x256xf32>
    %c0_22 = arith.constant 0 : index
    %c128_23 = arith.constant 128 : index
    %33 = vector.load %arg8[%c0_22, %c128_23] : memref<16x512xf32, #tpu.memory_space<vmem>>, vector<16x256xf32>
    %c0_24 = arith.constant 0 : index
    %c129 = arith.constant 129 : index
    %34 = vector.load %arg8[%c0_24, %c129] : memref<16x512xf32, #tpu.memory_space<vmem>>, vector<16x256xf32>
    %c14_i32_25 = arith.constant 14 : i32
    %35 = vector.broadcast %c14_i32_25 : i32 to vector<16x256xi32>
    %36 = arith.cmpi sle, %16, %35 : vector<16x256xi32>
    %cst_26 = arith.constant 0.000000e+00 : f32
    %37 = vector.broadcast %cst_26 : f32 to vector<16x256xf32>
    %38 = arith.select %36, %34, %37 : vector<16x256xi1>, vector<16x256xf32>
    %c0_27 = arith.constant 0 : index
    %c143 = arith.constant 143 : index
    %39 = vector.load %arg8[%c0_27, %c143] : memref<16x512xf32, #tpu.memory_space<vmem>>, vector<16x256xf32>
    %c1_i32_28 = arith.constant 1 : i32
    %40 = vector.broadcast %c1_i32_28 : i32 to vector<16x256xi32>
    %41 = arith.cmpi sge, %16, %40 : vector<16x256xi32>
    %cst_29 = arith.constant 0.000000e+00 : f32
    %42 = vector.broadcast %cst_29 : f32 to vector<16x256xf32>
    %43 = arith.select %41, %39, %42 : vector<16x256xi1>, vector<16x256xf32>
    %c0_30 = arith.constant 0 : index
    %c144 = arith.constant 144 : index
    %44 = vector.load %arg8[%c0_30, %c144] : memref<16x512xf32, #tpu.memory_space<vmem>>, vector<16x256xf32>
    %c0_31 = arith.constant 0 : index
    %c145 = arith.constant 145 : index
    %45 = vector.load %arg8[%c0_31, %c145] : memref<16x512xf32, #tpu.memory_space<vmem>>, vector<16x256xf32>
    %c14_i32_32 = arith.constant 14 : i32
    %46 = vector.broadcast %c14_i32_32 : i32 to vector<16x256xi32>
    %47 = arith.cmpi sle, %16, %46 : vector<16x256xi32>
    %cst_33 = arith.constant 0.000000e+00 : f32
    %48 = vector.broadcast %cst_33 : f32 to vector<16x256xf32>
    %49 = arith.select %47, %45, %48 : vector<16x256xi1>, vector<16x256xf32>
    %50 = tpu.concatenate %21, %22, %27, %32, %33, %38, %43, %44, %49 in 0 : vector<16x256xf32>, vector<16x256xf32>, vector<16x256xf32>, vector<16x256xf32>, vector<16x256xf32>, vector<16x256xf32>, vector<16x256xf32>, vector<16x256xf32>, vector<16x256xf32> -> vector<144x256xf32>
    %c0_34 = arith.constant 0 : index
    %c0_35 = arith.constant 0 : index
    %51 = vector.load %arg3[%c0_34, %c0_35] : memref<16x144xf32, #tpu.memory_space<vmem>>, vector<16x144xf32>
    %cst_36 = arith.constant dense<0.000000e+00> : vector<16x256xf32>
    %52 = tpu.matmul %51, %50, %cst_36 {dimension_numbers = #tpu.dot_dimension_numbers<[1], [0], [0], [1], [0, 0, 1, 1], [], []>} : vector<16x144xf32>, vector<144x256xf32>, vector<16x256xf32> -> vector<16x256xf32>
    %c0_37 = arith.constant 0 : index
    %c0_38 = arith.constant 0 : index
    %53 = vector.load %arg4[%c0_37, %c0_38] : memref<16x1xf32, #tpu.memory_space<vmem>>, vector<16x1xf32>
    %54 = vector.broadcast %53 : vector<16x1xf32> to vector<16x256xf32>
    %55 = arith.addf %52, %54 : vector<16x256xf32>
    %cst_39 = arith.constant 0.000000e+00 : f32
    %56 = vector.broadcast %cst_39 : f32 to vector<16x256xf32>
    %57 = arith.maximumf %55, %56 : vector<16x256xf32>
    %c0_40 = arith.constant 0 : index
    %c0_41 = arith.constant 0 : index
    %58 = vector.load %arg5[%c0_40, %c0_41] : memref<18x16xf32, #tpu.memory_space<vmem>>, vector<18x16xf32>
    %cst_42 = arith.constant dense<0.000000e+00> : vector<18x256xf32>
    %59 = tpu.matmul %58, %57, %cst_42 {dimension_numbers = #tpu.dot_dimension_numbers<[1], [0], [0], [1], [0, 0, 1, 1], [], []>} : vector<18x16xf32>, vector<16x256xf32>, vector<18x256xf32> -> vector<18x256xf32>
    %c0_43 = arith.constant 0 : index
    %c0_44 = arith.constant 0 : index
    %60 = vector.load %arg6[%c0_43, %c0_44] : memref<18x1xf32, #tpu.memory_space<vmem>>, vector<18x1xf32>
    %61 = vector.broadcast %60 : vector<18x1xf32> to vector<18x256xf32>
    %62 = arith.addf %59, %61 : vector<18x256xf32>
    %c16 = arith.constant 16 : index
    %c0_45 = arith.constant 0 : index
    %63 = vector.load %arg7[%c16, %c0_45] : memref<34x256xf32, #tpu.memory_space<vmem>>, vector<18x256xf32>
    tpu.vector_store %arg7[%c16, %c0_45], %62 {strides = array<i32>} : memref<34x256xf32, #tpu.memory_space<vmem>>, vector<18x256xf32>,
    return
  }
}

module attributes {stable_mosaic.version = 11 : i64} {
  func.func @_roi_losses_kernel(%arg0: memref<24x128xf32, #tpu.memory_space<vmem>>, %arg1: memref<24x128xf32, #tpu.memory_space<vmem>>, %arg2: memref<6x128xf32, #tpu.memory_space<vmem>>, %arg3: memref<6x128xf32, #tpu.memory_space<vmem>>, %arg4: memref<6x128xi32, #tpu.memory_space<vmem>>, %arg5: memref<32x64xf32, #tpu.memory_space<vmem>>, %arg6: memref<64x32xf32, #tpu.memory_space<vmem>>, %arg7: memref<1x32xf32, #tpu.memory_space<vmem>>, %arg8: memref<32x25xf32, #tpu.memory_space<vmem>>, %arg9: memref<1x25xf32, #tpu.memory_space<vmem>>, %arg10: memref<32x4xf32, #tpu.memory_space<vmem>>, %arg11: memref<32x1xi32, #tpu.memory_space<vmem>>, %arg12: memref<1x4xf32, #tpu.memory_space<smem>>) attributes {dimension_semantics = [], scalar_prefetch = 0 : i64, scratch_operands = 0 : i64, tpu.core_type = #tpu.core_type<tc>} {
    %c0 = arith.constant 0 : index
    %c0_0 = arith.constant 0 : index
    %0 = vector.load %arg5[%c0, %c0_0] : memref<32x64xf32, #tpu.memory_space<vmem>>, vector<32x64xf32>
    %c0_1 = arith.constant 0 : index
    %c0_2 = arith.constant 0 : index
    %1 = vector.load %arg6[%c0_1, %c0_2] : memref<64x32xf32, #tpu.memory_space<vmem>>, vector<64x32xf32>
    %cst = arith.constant dense<0.000000e+00> : vector<32x32xf32>
    %2 = tpu.matmul %0, %1, %cst {dimension_numbers = #tpu.dot_dimension_numbers<[1], [0], [0], [1], [0, 0, 1, 1], [], []>} : vector<32x64xf32>, vector<64x32xf32>, vector<32x32xf32> -> vector<32x32xf32>
    %c0_3 = arith.constant 0 : index
    %c0_4 = arith.constant 0 : index
    %3 = vector.load %arg7[%c0_3, %c0_4] : memref<1x32xf32, #tpu.memory_space<vmem>>, vector<1x32xf32>
    %4 = vector.broadcast %3 : vector<1x32xf32> to vector<32x32xf32>
    %5 = arith.addf %2, %4 : vector<32x32xf32>
    %cst_5 = arith.constant 0.000000e+00 : f32
    %6 = vector.broadcast %cst_5 : f32 to vector<32x32xf32>
    %7 = arith.maximumf %5, %6 : vector<32x32xf32>
    %c0_6 = arith.constant 0 : index
    %c0_7 = arith.constant 0 : index
    %8 = vector.load %arg8[%c0_6, %c0_7] : memref<32x25xf32, #tpu.memory_space<vmem>>, vector<32x25xf32>
    %cst_8 = arith.constant dense<0.000000e+00> : vector<32x25xf32>
    %9 = tpu.matmul %7, %8, %cst_8 {dimension_numbers = #tpu.dot_dimension_numbers<[1], [0], [0], [1], [0, 0, 1, 1], [], []>} : vector<32x32xf32>, vector<32x25xf32>, vector<32x25xf32> -> vector<32x25xf32>
    %c0_9 = arith.constant 0 : index
    %c0_10 = arith.constant 0 : index
    %10 = vector.load %arg9[%c0_9, %c0_10] : memref<1x25xf32, #tpu.memory_space<vmem>>, vector<1x25xf32>
    %11 = vector.broadcast %10 : vector<1x25xf32> to vector<32x25xf32>
    %12 = arith.addf %9, %11 : vector<32x25xf32>
    %13 = vector.extract_strided_slice %12 {offsets = [0, 0], sizes = [32, 20], strides = [1, 1]} : vector<32x25xf32> to vector<32x20xf32>
    %14 = vector.extract_strided_slice %12 {offsets = [0, 20], sizes = [32, 5], strides = [1, 1]} : vector<32x25xf32> to vector<32x5xf32>
    %c0_11 = arith.constant 0 : index
    %c0_12 = arith.constant 0 : index
    %15 = vector.load %arg11[%c0_11, %c0_12] : memref<32x1xi32, #tpu.memory_space<vmem>>, vector<32x1xi32>
    %16 = tpu.iota {dimensions = array<i32: 1>} : vector<32x20xi32>
    %c4_i32 = arith.constant 4 : i32
    %17 = vector.broadcast %c4_i32 : i32 to vector<32x1xi32>
    %18 = arith.muli %15, %17 : vector<32x1xi32>
    %19 = vector.broadcast %18 : vector<32x1xi32> to vector<32x20xi32>
    %20 = arith.cmpi sge, %16, %19 : vector<32x20xi32>
    %c4_i32_13 = arith.constant 4 : i32
    %21 = vector.broadcast %c4_i32_13 : i32 to vector<32x1xi32>
    %22 = arith.addi %18, %21 : vector<32x1xi32>
    %23 = vector.broadcast %22 : vector<32x1xi32> to vector<32x20xi32>
    %24 = arith.cmpi slt, %16, %23 : vector<32x20xi32>
    %25 = arith.andi %20, %24 : vector<32x20xi1>
    %cst_14 = arith.constant 0.000000e+00 : f32
    %26 = vector.broadcast %cst_14 : f32 to vector<32x20xf32>
    %27 = arith.select %25, %13, %26 : vector<32x20xi1>, vector<32x20xf32>
    %28 = vector.extract_strided_slice %27 {offsets = [0, 0], sizes = [32, 4], strides = [1, 1]} : vector<32x20xf32> to vector<32x4xf32>
    %29 = vector.extract_strided_slice %27 {offsets = [0, 4], sizes = [32, 4], strides = [1, 1]} : vector<32x20xf32> to vector<32x4xf32>
    %30 = arith.addf %28, %29 : vector<32x4xf32>
    %31 = vector.extract_strided_slice %27 {offsets = [0, 8], sizes = [32, 4], strides = [1, 1]} : vector<32x20xf32> to vector<32x4xf32>
    %32 = arith.addf %30, %31 : vector<32x4xf32>
    %33 = vector.extract_strided_slice %27 {offsets = [0, 12], sizes = [32, 4], strides = [1, 1]} : vector<32x20xf32> to vector<32x4xf32>
    %34 = arith.addf %32, %33 : vector<32x4xf32>
    %35 = vector.extract_strided_slice %27 {offsets = [0, 16], sizes = [32, 4], strides = [1, 1]} : vector<32x20xf32> to vector<32x4xf32>
    %36 = arith.addf %34, %35 : vector<32x4xf32>
    %c0_15 = arith.constant 0 : index
    %c0_16 = arith.constant 0 : index
    %37 = vector.load %arg4[%c0_15, %c0_16] : memref<6x128xi32, #tpu.memory_space<vmem>>, vector<6x128xi32>
    %c0_i32 = arith.constant 0 : i32
    %38 = vector.broadcast %c0_i32 : i32 to vector<6x128xi32>
    %39 = arith.cmpi sgt, %37, %38 : vector<6x128xi32>
    %40 = arith.extui %39 : vector<6x128xi1> to vector<6x128xi32>
    %41 = arith.sitofp %40 : vector<6x128xi32> to vector<6x128xf32>
    %c0_i32_17 = arith.constant 0 : i32
    %42 = vector.broadcast %c0_i32_17 : i32 to vector<6x128xi32>
    %43 = arith.cmpi sge, %37, %42 : vector<6x128xi32>
    %44 = arith.extui %43 : vector<6x128xi1> to vector<6x128xi32>
    %45 = arith.sitofp %44 : vector<6x128xi32> to vector<6x128xf32>
    %46 = vector.shape_cast %45 : vector<6x128xf32> to vector<1x6x128xf32>
    %cst_18 = arith.constant dense<0.000000e+00> : vector<1xf32>
    %47 = vector.multi_reduction <add>, %46, %cst_18 [1, 2] : vector<1x6x128xf32> to vector<1xf32>
    %48 = vector.shape_cast %47 : vector<1xf32> to vector<1x1x1xf32>
    %49 = vector.extract %48[0, 0, 0] : f32 from vector<1x1x1xf32>
    %cst_19 = arith.constant 1.000000e+00 : f32
    %50 = arith.maximumf %49, %cst_19 : f32
    %51 = tpu.concatenate %41, %41, %41, %41 in 0 : vector<6x128xf32>, vector<6x128xf32>, vector<6x128xf32>, vector<6x128xf32> -> vector<24x128xf32>
    %c0_20 = arith.constant 0 : index
    %c0_21 = arith.constant 0 : index
    %52 = vector.load %arg0[%c0_20, %c0_21] : memref<24x128xf32, #tpu.memory_space<vmem>>, vector<24x128xf32>
    %c0_22 = arith.constant 0 : index
    %c0_23 = arith.constant 0 : index
    %53 = vector.load %arg1[%c0_22, %c0_23] : memref<24x128xf32, #tpu.memory_space<vmem>>, vector<24x128xf32>
    %54 = arith.subf %52, %53 : vector<24x128xf32>
    %55 = arith.mulf %51, %54 : vector<24x128xf32>
    %56 = math.absf %55 : vector<24x128xf32>
    %cst_24 = arith.constant 0.111111112 : f32
    %57 = vector.broadcast %cst_24 : f32 to vector<24x128xf32>
    %58 = arith.cmpf olt, %56, %57 : vector<24x128xf32>
    %59 = arith.extui %58 : vector<24x128xi1> to vector<24x128xi32>
    %60 = arith.sitofp %59 : vector<24x128xi32> to vector<24x128xf32>
    %cst_25 = arith.constant 4.500000e+00 : f32
    %61 = vector.broadcast %cst_25 : f32 to vector<24x128xf32>
    %62 = arith.mulf %60, %61 : vector<24x128xf32>
    %63 = arith.mulf %62, %55 : vector<24x128xf32>
    %64 = arith.mulf %63, %55 : vector<24x128xf32>
    %cst_26 = arith.constant 1.000000e+00 : f32
    %65 = vector.broadcast %cst_26 : f32 to vector<24x128xf32>
    %66 = arith.subf %65, %60 : vector<24x128xf32>
    %cst_27 = arith.constant 0.055555556 : f32
    %67 = vector.broadcast %cst_27 : f32 to vector<24x128xf32>
    %68 = arith.subf %56, %67 : vector<24x128xf32>
    %69 = arith.mulf %66, %68 : vector<24x128xf32>
    %70 = arith.addf %64, %69 : vector<24x128xf32>
    %71 = vector.shape_cast %70 : vector<24x128xf32> to vector<1x24x128xf32>
    %cst_28 = arith.constant dense<0.000000e+00> : vector<1xf32>
    %72 = vector.multi_reduction <add>, %71, %cst_28 [1, 2] : vector<1x24x128xf32> to vector<1xf32>
    %73 = vector.shape_cast %72 : vector<1xf32> to vector<1x1x1xf32>
    %74 = vector.extract %73[0, 0, 0] : f32 from vector<1x1x1xf32>
    %75 = arith.divf %74, %50 : f32
    %c0_29 = arith.constant 0 : index
    %c0_30 = arith.constant 0 : index
    %76 = memref.load %arg12[%c0_29, %c0_30] : memref<1x4xf32, #tpu.memory_space<smem>>
    memref.store %75, %arg12[%c0_29, %c0_30] : memref<1x4xf32, #tpu.memory_space<smem>>
    %c0_31 = arith.constant 0 : index
    %c0_32 = arith.constant 0 : index
    %77 = vector.load %arg2[%c0_31, %c0_32] : memref<6x128xf32, #tpu.memory_space<vmem>>, vector<6x128xf32>
    %c0_33 = arith.constant 0 : index
    %c0_34 = arith.constant 0 : index
    %78 = vector.load %arg3[%c0_33, %c0_34] : memref<6x128xf32, #tpu.memory_space<vmem>>, vector<6x128xf32>
    %79 = arith.maximumf %77, %78 : vector<6x128xf32>
    %80 = arith.subf %77, %79 : vector<6x128xf32>
    %81 = math.exp %80 : vector<6x128xf32>
    %82 = arith.subf %78, %79 : vector<6x128xf32>
    %83 = math.exp %82 : vector<6x128xf32>
    %84 = arith.addf %81, %83 : vector<6x128xf32>
    %85 = math.log %84 : vector<6x128xf32>
    %86 = arith.addf %79, %85 : vector<6x128xf32>
    %c1_i32 = arith.constant 1 : i32
    %87 = vector.broadcast %c1_i32 : i32 to vector<6x128xi32>
    %88 = arith.cmpi eq, %37, %87 : vector<6x128xi32>
    %89 = arith.select %88, %78, %77 : vector<6x128xi1>, vector<6x128xf32>
    %90 = arith.subf %86, %89 : vector<6x128xf32>
    %91 = arith.mulf %90, %45 : vector<6x128xf32>
    %92 = vector.shape_cast %91 : vector<6x128xf32> to vector<1x6x128xf32>
    %cst_35 = arith.constant dense<0.000000e+00> : vector<1xf32>
    %93 = vector.multi_reduction <add>, %92, %cst_35 [1, 2] : vector<1x6x128xf32> to vector<1xf32>
    %94 = vector.shape_cast %93 : vector<1xf32> to vector<1x1x1xf32>
    %95 = vector.extract %94[0, 0, 0] : f32 from vector<1x1x1xf32>
    %96 = arith.divf %95, %50 : f32
    %c0_36 = arith.constant 0 : index
    %c1 = arith.constant 1 : index
    %97 = memref.load %arg12[%c0_36, %c1] : memref<1x4xf32, #tpu.memory_space<smem>>
    memref.store %96, %arg12[%c0_36, %c1] : memref<1x4xf32, #tpu.memory_space<smem>>
    %c0_i32_37 = arith.constant 0 : i32
    %98 = vector.broadcast %c0_i32_37 : i32 to vector<32x1xi32>
    %99 = arith.cmpi sgt, %15, %98 : vector<32x1xi32>
    %100 = arith.extui %99 : vector<32x1xi1> to vector<32x1xi32>
    %101 = arith.sitofp %100 : vector<32x1xi32> to vector<32x1xf32>
    %c0_i32_38 = arith.constant 0 : i32
    %102 = vector.broadcast %c0_i32_38 : i32 to vector<32x1xi32>
    %103 = arith.cmpi sge, %15, %102 : vector<32x1xi32>
    %104 = arith.extui %103 : vector<32x1xi1> to vector<32x1xi32>
    %105 = arith.sitofp %104 : vector<32x1xi32> to vector<32x1xf32>
    %c0_39 = arith.constant 0 : index
    %c0_40 = arith.constant 0 : index
    %106 = vector.load %arg10[%c0_39, %c0_40] : memref<32x4xf32, #tpu.memory_space<vmem>>, vector<32x4xf32>
    %107 = arith.subf %36, %106 : vector<32x4xf32>
    %108 = vector.broadcast %101 : vector<32x1xf32> to vector<32x4xf32>
    %109 = arith.mulf %108, %107 : vector<32x4xf32>
    %110 = vector.shape_cast %105 : vector<32x1xf32> to vector<1x32x1xf32>
    %cst_41 = arith.constant dense<0.000000e+00> : vector<1xf32>
    %111 = vector.multi_reduction <add>, %110, %cst_41 [1, 2] : vector<1x32x1xf32> to vector<1xf32>
    %112 = vector.shape_cast %111 : vector<1xf32> to vector<1x1x1xf32>
    %113 = vector.extract %112[0, 0, 0] : f32 from vector<1x1x1xf32>
    %cst_42 = arith.constant 1.000000e+00 : f32
    %114 = arith.maximumf %113, %cst_42 : f32
    %115 = math.absf %109 : vector<32x4xf32>
    %cst_43 = arith.constant 1.000000e+00 : f32
    %116 = vector.broadcast %cst_43 : f32 to vector<32x4xf32>
    %117 = arith.cmpf olt, %115, %116 : vector<32x4xf32>
    %118 = arith.extui %117 : vector<32x4xi1> to vector<32x4xi32>
    %119 = arith.sitofp %118 : vector<32x4xi32> to vector<32x4xf32>
    %cst_44 = arith.constant 5.000000e-01 : f32
    %120 = vector.broadcast %cst_44 : f32 to vector<32x4xf32>
    %121 = arith.mulf %119, %120 : vector<32x4xf32>
    %122 = arith.mulf %121, %109 : vector<32x4xf32>
    %123 = arith.mulf %122, %109 : vector<32x4xf32>
    %cst_45 = arith.constant 1.000000e+00 : f32
    %124 = vector.broadcast %cst_45 : f32 to vector<32x4xf32>
    %125 = arith.subf %124, %119 : vector<32x4xf32>
    %cst_46 = arith.constant 5.000000e-01 : f32
    %126 = vector.broadcast %cst_46 : f32 to vector<32x4xf32>
    %127 = arith.subf %115, %126 : vector<32x4xf32>
    %128 = arith.mulf %125, %127 : vector<32x4xf32>
    %129 = arith.addf %123, %128 : vector<32x4xf32>
    %130 = vector.shape_cast %129 : vector<32x4xf32> to vector<1x32x4xf32>
    %cst_47 = arith.constant dense<0.000000e+00> : vector<1xf32>
    %131 = vector.multi_reduction <add>, %130, %cst_47 [1, 2] : vector<1x32x4xf32> to vector<1xf32>
    %132 = vector.shape_cast %131 : vector<1xf32> to vector<1x1x1xf32>
    %133 = vector.extract %132[0, 0, 0] : f32 from vector<1x1x1xf32>
    %134 = arith.divf %133, %114 : f32
    %c0_48 = arith.constant 0 : index
    %c2 = arith.constant 2 : index
    %135 = memref.load %arg12[%c0_48, %c2] : memref<1x4xf32, #tpu.memory_space<smem>>
    memref.store %134, %arg12[%c0_48, %c2] : memref<1x4xf32, #tpu.memory_space<smem>>
    %cst_49 = arith.constant dense<0xFF800000> : vector<32xf32>
    %136 = vector.multi_reduction <maximumf>, %14, %cst_49 [1] : vector<32x5xf32> to vector<32xf32>
    %137 = vector.shape_cast %136 : vector<32xf32> to vector<32x1xf32>
    %138 = vector.broadcast %137 : vector<32x1xf32> to vector<32x5xf32>
    %139 = arith.subf %14, %138 : vector<32x5xf32>
    %140 = math.exp %139 : vector<32x5xf32>
    %cst_50 = arith.constant dense<0.000000e+00> : vector<32xf32>
    %141 = vector.multi_reduction <add>, %140, %cst_50 [1] : vector<32x5xf32> to vector<32xf32>
    %142 = vector.shape_cast %141 : vector<32xf32> to vector<32x1xf32>
    %143 = math.log %142 : vector<32x1xf32>
    %144 = arith.addf %137, %143 : vector<32x1xf32>
    %145 = tpu.iota {dimensions = array<i32: 1>} : vector<32x5xi32>
    %146 = vector.broadcast %15 : vector<32x1xi32> to vector<32x5xi32>
    %147 = arith.cmpi eq, %145, %146 : vector<32x5xi32>
    %cst_51 = arith.constant 0.000000e+00 : f32
    %148 = vector.broadcast %cst_51 : f32 to vector<32x5xf32>
    %149 = arith.select %147, %14, %148 : vector<32x5xi1>, vector<32x5xf32>
    %cst_52 = arith.constant dense<0.000000e+00> : vector<32xf32>
    %150 = vector.multi_reduction <add>, %149, %cst_52 [1] : vector<32x5xf32> to vector<32xf32>
    %151 = vector.shape_cast %150 : vector<32xf32> to vector<32x1xf32>
    %c-100_i32 = arith.constant -100 : i32
    %152 = vector.broadcast %c-100_i32 : i32 to vector<32x1xi32>
    %153 = arith.cmpi ne, %15, %152 : vector<32x1xi32>
    %154 = arith.extui %153 : vector<32x1xi1> to vector<32x1xi32>
    %155 = arith.sitofp %154 : vector<32x1xi32> to vector<32x1xf32>
    %156 = arith.subf %144, %151 : vector<32x1xf32>
    %157 = arith.mulf %156, %155 : vector<32x1xf32>
    %158 = vector.shape_cast %157 : vector<32x1xf32> to vector<1x32x1xf32>
    %cst_53 = arith.constant dense<0.000000e+00> : vector<1xf32>
    %159 = vector.multi_reduction <add>, %158, %cst_53 [1, 2] : vector<1x32x1xf32> to vector<1xf32>
    %160 = vector.shape_cast %159 : vector<1xf32> to vector<1x1x1xf32>
    %161 = vector.extract %160[0, 0, 0] : f32 from vector<1x1x1xf32>
    %162 = vector.shape_cast %155 : vector<32x1xf32> to vector<1x32x1xf32>
    %cst_54 = arith.constant dense<0.000000e+00> : vector<1xf32>
    %163 = vector.multi_reduction <add>, %162, %cst_54 [1, 2] : vector<1x32x1xf32> to vector<1xf32>
    %164 = vector.shape_cast %163 : vector<1xf32> to vector<1x1x1xf32>
    %165 = vector.extract %164[0, 0, 0] : f32 from vector<1x1x1xf32>
    %cst_55 = arith.constant 1.000000e+00 : f32
    %166 = arith.maximumf %165, %cst_55 : f32
    %167 = arith.divf %161, %166 : f32
    %c0_56 = arith.constant 0 : index
    %c3 = arith.constant 3 : index
    %168 = memref.load %arg12[%c0_56, %c3] : memref<1x4xf32, #tpu.memory_space<smem>>
    memref.store %167, %arg12[%c0_56, %c3] : memref<1x4xf32, #tpu.memory_space<smem>>
    return
  }
}

</mosaic_0001>

<bundles_post_ra>
// kernel: forward.2
= control target key start
LH: loop header
LB: loop body
LE: loop exit
PB: predicated region body
PF: predicated region fallthrough
CT: control target
= control target key end

     0   :  { %vm57_vm0 = vcmask 1043456   ;;  %v674_v3 = vmov 0   ;;  %vm50_vm1 = vcmask 293888   ;;  %v675_v15 = vmov 0.0   ;;  %s677_s29 = smov 127   ;;  %s679_s30 = smov 15   ;;  %s1070_s0 = inlined_call_operand.vmem [shape: f32[36,256], index: 0, kind: input, shape index: {}]   ;;  %s1071_s2 = inlined_call_operand.vmem [shape: f32[16,1], index: 2, kind: input, shape index: {}]   ;;  %s1072_s1 = inlined_call_operand.vmem [shape: f32[16,36], index: 1, kind: input, shape index: {}]   ;;  %s1073_s7 = inlined_call_operand.vmem [shape: f32[34,256], index: 7, kind: output, shape index: {}]   ;;  %s1074_s4 = inlined_call_operand.vmem [shape: f32[16,1], index: 4, kind: input, shape index: {}]   ;;  %s1075_s6 = inlined_call_operand.vmem [shape: f32[18,1], index: 6, kind: input, shape index: {}]   ;;  %s1076_s3 = inlined_call_operand.vmem [shape: f32[16,144], index: 3, kind: input, shape index: {}]   ;;  %s1077_s5 = inlined_call_operand.vmem [shape: f32[18,16], index: 5, kind: input, shape index: {}]  }
   0x1   :  { %v36_v0 = vld [vmem:[%s1070_s0 + $0x40] sm:$0xf]  ;;  %v37_v1 = vld [vmem:[%s1070_s0 + $0x48] sm:$0xf]  ;;  %v34_v2 = vld [vmem:[%s1070_s0 + $0x30] sm:$0xff]  ;;  %611 = vset.pattern.permute.xlu0 %v674_v3  ;;  %672 = vset.pattern.permute.xlu2 %v674_v3  ;;  %s680_s9 = smov 112   ;;  %v126_v57 = vlaneseq }
   0x2   :  { %561 = vmatpush.msk.msra.mxu2 %vm57_vm0, %v36_v0  ;;  %564 = vmatpush.msk.msra.mxu1 %vm57_vm0, %v37_v1  ;;  %v35_v4 = vld [vmem:[%s1070_s0 + $0x38] sm:$0xff]  ;;  %v39_v5 = vld [vmem:[%s1071_s2 + $0x8] sm:$0xff]  ;;  %v32_v6 = vld [vmem:[%s1070_s0 + $0x20] sm:$0xff]  ;;  %s681_s12 = smov 111   ;;  %s682_s17 = smov 16   ;;  %vm296_vm3 = vcmask 908288  }
   0x3   :  { %47 = vperm.xlu0 %611, %v39_v5   ;;  %v33_v7 = vld [vmem:[%s1070_s0 + $0x28] sm:$0xff]  ;;  %673 = vset.pattern.permute.xlu1 %v674_v3  ;;  %v30_v8 = vld [vmem:[%s1070_s0 + $0x10] sm:$0xff]  ;;  %v31_v9 = vld [vmem:[%s1070_s0 + $0x18] sm:$0xff]  ;;  %s683_s18 = smov 17   ;;  %v127_v58 = vand.u32 127, %v126_v57  ;;  %vm342_vm4 = vcmask 916480  }
   0x4   :  { %76 = vmatpush.msra.mxu2 %v34_v2  ;;  %99 = vmatpush.msra.mxu1 %v35_v4  ;;  %v28_v10 = vld [vmem:[%s1070_s0] sm:$0xff]  ;;  %v29_v11 = vld [vmem:[%s1070_s0 + $0x8] sm:$0xff]  ;;  %s676_s0 = smov 113   ;;  %v474_v36 = vld [vmem:[%s1075_s6 + $0x10] sm:$0x3]  ;;  %vm321_vm6 = vcmask 130048  }
   0x5   :  { %v26_v12 = vld [vmem:[%s1072_s1] sm:$0xff]  ;;  %v27_v14 = vld [vmem:[%s1072_s1 + $0x8] sm:$0xff]  ;;  %613 = vrot.lane.b32.xlu1 %v675_v15, %s676_s0  ;;  %v129_v62 = vand.u32 15, %v127_v58  ;;  %v128_v63 = vadd.s32 128, %v127_v58  ;;  %vm271_vm7 = vcmask 924672   ;;  %vm246_vm9 = vcmask 1039360  }
   0x6   :  { %77 = vmatpush.msra.mxu2 %v32_v6  ;;  %100 = vmatpush.msra.mxu1 %v33_v7  ;;  %v38_v13 = vld [vmem:[%s1071_s2] sm:$0xff]  ;;  %s678_s2 = smov 1   ;;  %vm209_vm11 = vcmask 7168   ;;  %vm184_vm12 = vcmask 121856   ;;  %vm157_vm13 = vcmask 138240  }
   0x7   :  { %v355_v35 = vld [vmem:[%s1074_s4] sm:$0xff]  ;;  %vm891_vm2 = vcmp.le.s32.totalorder %v129_v62, 14  ;;  %vm910_vm5 = vcmp.ge.s32.totalorder %v129_v62, 1 }
   0x8   :  { %78 = vmatpush.msra.mxu2 %v30_v8  ;;  %101 = vmatpush.msra.mxu1 %v31_v9 }
   0xa   :  { %79 = vmatpush.msra.mxu2 %v28_v10  ;;  %102 = vmatpush.msra.mxu1 %v29_v11  ;;  %v130_v11 = vand.u32 15, %v128_v63 }
   0xb   :  { %562 = vmatmul.msk.f32.vlgmr.msra.gmra.mxu2 %vm50_vm1, %v26_v12  ;;  %565 = vmatmul.msk.f32.vlgmr.msra.gmra.mxu1 %vm50_vm1, %v26_v12 }
   0xc   :  { %42 = vperm.xlu0 %611, %v38_v13   ;;  %vm915_vm8 = vcmp.ge.s32.totalorder %v130_v11, 1  ;;  %vm930_vm10 = vcmp.le.s32.totalorder %v130_v11, 14  ;;  %v351_v11 = vld [vmem:[%s1076_s3] sm:$0xff] }
   0xd   :  { %623 = vrot.lane.b32.xlu1 %v675_v15, %s678_s2 }
  0x13   :  { %563 = vmatmul.msk.f32.gmra.mxu2 %vm50_vm1, %v27_v14  ;;  %566 = vmatmul.msk.f32.gmra.mxu1 %vm50_vm1, %v27_v14 }
  0x14   :  { %618 = vrot.lane.b32.xlu0 %v675_v15, %s677_s29 }
  0x1c   :  { %628 = vrot.lane.b32.xlu0 %v675_v15, %s679_s30 }
  0x75   :  { %v48_v16 = vpop.permute.xlu0 %47 }
  0x77   :  { %v861_v39 = vpop.permute.xlu1 %613 }
  0x7e   :  { %v43_v17 = vpop.permute.xlu0 %42 }
  0x7f   :  { %v867_v42 = vpop.permute.xlu1 %623 }
  0x86   :  { %v863_v40 = vpop.permute.xlu0 %618 }
  0x88   :  { %v104_v18 = vpop.f32.mrf.mxu1 }
  0x89   :  { %v105_v19 = vadd.f32 %v104_v18, %v43_v17  ;;  %v615_v18 = vunpack.i.l.bf16 %v861_v39 }
  0x8b   :  { %v774_v20 = vmax.f32 %v105_v19, 0.0 }
  0x8d   :  { %176 = vrot.lane.b32.xlu1 %v774_v20, %s679_s30  ;;  %261 = vrot.lane.b32.xlu0 %v774_v20, %s676_s0  ;;  %v632_v21 = vpack.i.bf16 0.0, %v774_v20  ;;  %115 = vst [vmem:[%s1073_s7 + $0x8] sm:$0xff] %v774_v20 }
  0x8e   :  { %v81_v22 = vpop.f32.mrf.mxu2  ;;  %v869_v43 = vpop.permute.xlu0 %628 }
  0x8f   :  { %v82_v23 = vadd.f32 %v81_v22, %v43_v17  ;;  %633 = vrot.lane.b32.xlu2 %v632_v21, %s680_s9 }
  0x90   :  { %v107_v24 = vpop.f32.mrf.mxu1 }
  0x91   :  { %v785_v25 = vmax.f32 %v82_v23, 0.0  ;;  %v108_v26 = vadd.f32 %v107_v24, %v48_v16  ;;  %v616_v23 = vunpack.i.h.bf16 %v861_v39 }
  0x93   :  { %v787_v27 = vmax.f32 %v108_v26, 0.0  ;;  %v637_v28 = vpack.i.bf16 %v785_v25, %v675_v15  ;;  %114 = vst [vmem:[%s1073_s7] sm:$0xff] %v785_v25  ;;  %v652_v34 = vpack.i.bf16 %v774_v20, %v785_v25 }
  0x95   :  { %286 = vrot.lane.b32.xlu0 %v774_v20, %s681_s12  ;;  %638 = vrot.lane.b32.xlu1 %v637_v28, %s680_s9  ;;  %117 = vst [vmem:[%s1073_s7 + $0x18] sm:$0xff] %v787_v27  ;;  %v647_v33 = vpack.i.bf16 0.0, %v787_v27  ;;  %v621_v28 = vunpack.i.h.bf16 %v863_v40 }
  0x96   :  { %v84_v29 = vpop.f32.mrf.mxu2 }
  0x97   :  { %v85_v30 = vadd.f32 %v84_v29, %v48_v16  ;;  %236 = vrot.lane.b32.xlu2 %v774_v20, %s677_s29 }
  0x99   :  { %v803_v31 = vmax.f32 %v85_v30, 0.0  ;;  %v620_v30 = vunpack.i.l.bf16 %v863_v40 }
  0x9b   :  { %116 = vst [vmem:[%s1073_s7 + $0x10] sm:$0xff] %v803_v31  ;;  %v642_v32 = vpack.i.bf16 %v787_v27, %v803_v31  ;;  %v662_v37 = vpack.i.bf16 %v803_v31, %v675_v15 }
  0x9d   :  { %174 = vrot.lane.b32.xlu0 %v785_v25, %s679_s30  ;;  %234 = vrot.lane.b32.xlu1 %v785_v25, %s677_s29 }
  0x9f   :  { %201 = vrot.lane.b32.xlu2 %v774_v20, %s678_s2 }
  0xa5   :  { %267 = vrot.lane.b32.xlu0 %v787_v27, %s676_s0  ;;  %199 = vrot.lane.b32.xlu1 %v785_v25, %s678_s2 }
  0xa7   :  { %259 = vrot.lane.b32.xlu2 %v785_v25, %s676_s0 }
  0xad   :  { %207 = vrot.lane.b32.xlu0 %v787_v27, %s678_s2  ;;  %292 = vrot.lane.b32.xlu1 %v787_v27, %s681_s12 }
  0xaf   :  { %284 = vrot.lane.b32.xlu2 %v785_v25, %s681_s12 }
  0xb5   :  { %290 = vrot.lane.b32.xlu0 %v803_v31, %s681_s12  ;;  %643 = vrot.lane.b32.xlu1 %v642_v32, %s680_s9 }
  0xb7   :  { %242 = vrot.lane.b32.xlu2 %v787_v27, %s677_s29 }
  0xbd   :  { %648 = vrot.lane.b32.xlu0 %v647_v33, %s682_s17  ;;  %240 = vrot.lane.b32.xlu1 %v803_v31, %s677_s29 }
  0xbf   :  { %182 = vrot.lane.b32.xlu2 %v787_v27, %s679_s30 }
  0xc5   :  { %153 = vrot.lane.b32.xlu0 %v803_v31, %s683_s18  ;;  %653 = vrot.lane.b32.xlu1 %v652_v34, %s682_s17 }
  0xc7   :  { %265 = vrot.lane.b32.xlu2 %v803_v31, %s676_s0 }
  0xcd   :  { %149 = vrot.lane.b32.xlu0 %v774_v20, %s683_s18  ;;  %180 = vrot.lane.b32.xlu1 %v803_v31, %s679_s30 }
  0xcf   :  { %658 = vrot.lane.b32.xlu2 %v675_v15, %s683_s18 }
  0xd5   :  { %359 = vperm.xlu0 %611, %v355_v35   ;;  %155 = vrot.lane.b32.xlu1 %v787_v27, %s683_s18  ;;  %v940_v35 = vld [vmem:[%s1076_s3 + $0x18] sm:$0xff] }
  0xd7   :  { %205 = vrot.lane.b32.xlu2 %v803_v31, %s678_s2 }
  0xdd   :  { %487 = vperm.xlu0 %611, %v474_v36   ;;  %668 = vrot.lane.b32.xlu1 %v675_v15, %s681_s12  ;;  %v906_v15 = vld [vmem:[%s1076_s3 + $0x8] sm:$0xff] }
  0xdf   :  { %663 = vrot.lane.b32.xlu2 %v662_v37, %s682_s17 }
  0xe7   :  { %147 = vrot.lane.b32.xlu2 %v785_v25, %s683_s18 }
  0xe9   :  { %v634_v38 = vpop.permute.xlu2 %633 }
  0xea   :  { %v636_v8 = vunpack.i.h.bf16 %v634_v38  ;;  %v635_v9 = vunpack.i.l.bf16 %v634_v38 }
  0xec   :  { %v344_v19 = vsel %vm342_vm4, %v635_v9, %v636_v8 }
  0xf1   :  { %v865_v41 = vpop.permute.xlu2 %236 }
  0xf2   :  { %v248_v40 = vsel %vm246_vm9, %v865_v41, %v621_v28 }
  0xf9   :  { %v871_v44 = vpop.permute.xlu2 %201 }
  0xff   :  { %v873_v45 = vpop.permute.xlu1 %176  ;;  %v262_v46 = vpop.permute.xlu0 %261 }
 0x100   :  { %v273_v32 = vsel %vm271_vm7, %v262_v46, %v616_v23 }
 0x101   :  { %v260_v47 = vpop.permute.xlu2 %259 }
 0x102   :  { %v272_v29 = vsel %vm271_vm7, %v260_v47, %v262_v46  ;;  %v625_v47 = vunpack.i.l.bf16 %v867_v42 }
 0x107   :  { %v875_v48 = vpop.permute.xlu0 %286  ;;  %v639_v49 = vpop.permute.xlu1 %638 }
 0x108   :  { %v641_v1 = vunpack.i.h.bf16 %v639_v49  ;;  %v640_v4 = vunpack.i.l.bf16 %v639_v49  ;;  %v626_v49 = vunpack.i.h.bf16 %v867_v42  ;;  %v631_v42 = vunpack.i.h.bf16 %v869_v43 }
 0x109   :  { %v285_v50 = vpop.permute.xlu2 %284 }
 0x10a   :  { %v297_v13 = vsel %vm296_vm3, %v285_v50, %v875_v48  ;;  %v343_v16 = vsel %vm342_vm4, %v641_v1, %v635_v9 }
 0x10f   :  { %v877_v51 = vpop.permute.xlu0 %174  ;;  %v879_v52 = vpop.permute.xlu1 %234 }
 0x110   :  { %v247_v38 = vsel %vm246_vm9, %v879_v52, %v865_v41  ;;  %v186_v63 = vsel %vm184_vm12, %v877_v51, %v873_v45 }
 0x111   :  { %v881_v53 = vpop.permute.xlu2 %242 }
 0x112   :  { %v250_v37 = vsel %vm246_vm9, %v881_v53, %v620_v30 }
 0x117   :  { %v268_v54 = vpop.permute.xlu0 %267  ;;  %v883_v55 = vpop.permute.xlu1 %199 }
 0x118   :  { %v275_v26 = vsel %vm271_vm7, %v268_v54, %v615_v18  ;;  %v353_v18 = vld [vmem:[%s1076_s3 + $0x10] sm:$0xff] }
 0x119   :  { %v885_v56 = vpop.permute.xlu2 %182 }
 0x11f   :  { %v887_v59 = vpop.permute.xlu0 %207  ;;  %v889_v60 = vpop.permute.xlu1 %292 }
 0x121   :  { %v266_v61 = vpop.permute.xlu2 %265 }
 0x122   :  { %v274_v22 = vsel %vm271_vm7, %v266_v61, %v268_v54 }
 0x127   :  { %v291_v2 = vpop.permute.xlu0 %290  ;;  %v644_v3 = vpop.permute.xlu1 %643 }
 0x128   :  { %v646_v5 = vunpack.i.h.bf16 %v644_v3  ;;  %v645_v6 = vunpack.i.l.bf16 %v644_v3  ;;  %v299_v7 = vsel %vm296_vm3, %v291_v2, %v889_v60  ;;  %v473_v3 = vld [vmem:[%s1075_s6 + $0x8] sm:$0xff] }
 0x129   :  { %v897_v10 = vpop.permute.xlu2 %658  ;;  %577 = vmatpush.msk.msra.mxu3 %vm891_vm2, %v299_v7 }
 0x12a   :  { %v345_v12 = vsel %vm342_vm4, %v645_v6, %v646_v5  ;;  %v346_v14 = vsel %vm342_vm4, %v646_v5, %v640_v4  ;;  %v660_v45 = vunpack.i.l.bf16 %v897_v10  ;;  %v661_v6 = vunpack.i.h.bf16 %v897_v10 }
 0x12b   :  { %373 = vmatpush.msrb.mxu2 %v345_v12  ;;  %578 = vmatpush.msk.msra.mxu3 %vm891_vm2, %v297_v13 }
 0x12c   :  { %579 = vmatmul.msk.f32.vlgmr.msra.gmra.mxu3 %vm321_vm6, %v906_v15 }
 0x12d   :  { %419 = vmatpush.msrb.mxu3 %v346_v14  ;;  %374 = vmatpush.msrb.mxu2 %v343_v16 }
 0x12f   :  { %420 = vmatpush.msrb.mxu3 %v344_v19  ;;  %v241_v24 = vpop.permute.xlu1 %240  ;;  %567 = vmatpush.msk.msrb.mxu2 %vm910_vm5, %v274_v22  ;;  %v649_v39 = vpop.permute.xlu0 %648 }
 0x130   :  { %v249_v34 = vsel %vm246_vm9, %v241_v24, %v881_v53 }
 0x131   :  { %581 = vmatpush.msk.msrb.mxu3 %vm915_vm8, %v275_v26  ;;  %568 = vmatpush.msk.msrb.mxu2 %vm910_vm5, %v272_v29  ;;  %v206_v36 = vpop.permute.xlu2 %205 }
 0x132   :  { %v212_v41 = vsel %vm209_vm11, %v625_v47, %v206_v36  ;;  %v213_v50 = vsel %vm209_vm11, %v206_v36, %v887_v59 }
 0x133   :  { %582 = vmatpush.msk.msrb.mxu3 %vm915_vm8, %v273_v32  ;;  %569 = vmatpush.msk.msrb.mxu2 %vm891_vm2, %v249_v34 }
 0x134   :  { %580 = vmatmul.msk.f32.gmra.mxu3 %vm321_vm6, %v940_v35 }
 0x135   :  { %583 = vmatpush.msk.msrb.mxu3 %vm930_vm10, %v250_v37  ;;  %570 = vmatpush.msk.msrb.mxu2 %vm891_vm2, %v247_v38 }
 0x137   :  { %584 = vmatpush.msk.msrb.mxu3 %vm930_vm10, %v248_v40  ;;  %v654_v46 = vpop.permute.xlu1 %653  ;;  %379 = vmatpush.msrb.mxu2 %v803_v31  ;;  %v210_v31 = vsel %vm209_vm11, %v626_v49, %v883_v55  ;;  %v154_v53 = vpop.permute.xlu0 %153  ;;  %v469_v49 = vld [vmem:[%s1077_s5] sm:$0xff] }
 0x138   :  { %v656_v61 = vunpack.i.h.bf16 %v654_v46  ;;  %v655_v62 = vunpack.i.l.bf16 %v654_v46  ;;  %v160_v7 = vsel %vm157_vm13, %v660_v45, %v154_v53 }
 0x139   :  { %425 = vmatpush.msrb.mxu3 %v787_v27  ;;  %380 = vmatpush.msrb.mxu2 %v785_v25  ;;  %v664_v52 = vpop.permute.xlu2 %663  ;;  %v211_v25 = vsel %vm209_vm11, %v883_v55, %v871_v44  ;;  %v356_v27 = vld [vmem:[%s1074_s4 + $0x8] sm:$0xff]  ;;  %v185_v55 = vsel %vm184_vm12, %v631_v42, %v877_v51 }
 0x13a   :  { %364 = vperm.xlu2 %672, %v356_v27   ;;  %v666_v57 = vunpack.i.h.bf16 %v664_v52  ;;  %v665_v58 = vunpack.i.l.bf16 %v664_v52  ;;  %v323_v0 = vsel %vm321_vm6, %v655_v62, %v656_v61 }
 0x13b   :  { %426 = vmatpush.msrb.mxu3 %v774_v20  ;;  %571 = vmatpush.msk.msrb.mxu2 %vm910_vm5, %v212_v41  ;;  %v630_v20 = vunpack.i.l.bf16 %v869_v43  ;;  %v650_v43 = vunpack.i.l.bf16 %v649_v39 }
 0x13c   :  { %v324_v1 = vsel %vm321_vm6, %v665_v58, %v666_v57 }
 0x13d   :  { %585 = vmatpush.msk.msrb.mxu3 %vm915_vm8, %v213_v50  ;;  %572 = vmatpush.msk.msrb.mxu2 %vm910_vm5, %v210_v31  ;;  %v325_v2 = vsel %vm321_vm6, %v666_v57, %v650_v43  ;;  %v470_v50 = vld [vmem:[%s1077_s5 + $0x8] sm:$0xff]  ;;  %v471_v31 = vld [vmem:[%s1077_s5 + $0x10] sm:$0x3] }
 0x13f   :  { %586 = vmatpush.msk.msrb.mxu3 %vm915_vm8, %v211_v25  ;;  %v181_v54 = vpop.permute.xlu1 %180  ;;  %v150_v9 = vpop.permute.xlu0 %149 }
 0x140   :  { %v187_v59 = vsel %vm184_vm12, %v630_v20, %v181_v54  ;;  %v188_v44 = vsel %vm184_vm12, %v181_v54, %v885_v56  ;;  %v651_v56 = vunpack.i.h.bf16 %v649_v39 }
 0x141   :  { %573 = vmatpush.msk.msrb.mxu2 %vm891_vm2, %v187_v59  ;;  %587 = vmatpush.msk.msrb.mxu3 %vm930_vm10, %v188_v44  ;;  %v148_v4 = vpop.permute.xlu2 %147 }
 0x142   :  { %v322_v51 = vsel %vm321_vm6, %v651_v56, %v655_v62  ;;  %482 = vperm.xlu2 %672, %v473_v3   ;;  %v158_v12 = vsel %vm157_vm13, %v661_v6, %v148_v4  ;;  %v159_v10 = vsel %vm157_vm13, %v148_v4, %v150_v9 }
 0x143   :  { %574 = vmatpush.msk.msrb.mxu2 %vm891_vm2, %v185_v55  ;;  %588 = vmatpush.msk.msrb.mxu3 %vm930_vm10, %v186_v63 }
 0x145   :  { %385 = vmatpush.msrb.mxu2 %v324_v1  ;;  %431 = vmatpush.msrb.mxu3 %v325_v2 }
 0x147   :  { %v156_v5 = vpop.permute.xlu1 %155  ;;  %386 = vmatpush.msrb.mxu2 %v322_v51  ;;  %432 = vmatpush.msrb.mxu3 %v323_v0  ;;  %v360_v26 = vpop.permute.xlu0 %359 }
 0x148   :  { %v161_v8 = vsel %vm157_vm13, %v154_v53, %v156_v5 }
 0x149   :  { %575 = vmatpush.msk.msrb.mxu2 %vm910_vm5, %v160_v7  ;;  %589 = vmatpush.msk.msrb.mxu3 %vm915_vm8, %v161_v8 }
 0x14b   :  { %576 = vmatpush.msk.msrb.mxu2 %vm910_vm5, %v158_v12  ;;  %590 = vmatpush.msk.msrb.mxu3 %vm915_vm8, %v159_v10 }
 0x14c   :  { %389 = vmatmul.f32.vlgmr.msrb.gmra.mxu2 %v351_v11  ;;  %435 = vmatmul.f32.vlgmr.msrb.gmra.mxu3 %v351_v11 }
 0x14f   :  { %v669_v13 = vpop.permute.xlu1 %668  ;;  %v488_v44 = vpop.permute.xlu0 %487 }
 0x150   :  { %v671_v14 = vunpack.i.h.bf16 %v669_v13  ;;  %v670_v16 = vunpack.i.l.bf16 %v669_v13 }
 0x152   :  { %v300_v19 = vsel %vm296_vm3, %v889_v60, %v670_v16  ;;  %v298_v17 = vsel %vm296_vm3, %v875_v48, %v671_v14  ;;  %v472_v60 = vld [vmem:[%s1075_s6] sm:$0xff] }
 0x153   :  { %591 = vmatpush.msk.msra.mxu0 %vm930_vm10, %v300_v19  ;;  %477 = vperm.xlu1 %673, %v472_v60  }
 0x154   :  { %392 = vmatmul.f32.gmra.mxu2 %v353_v18  ;;  %438 = vmatmul.f32.gmra.mxu3 %v353_v18 }
 0x155   :  { %592 = vmatpush.msk.msra.mxu0 %vm930_vm10, %v298_v17 }
 0x156   :  { %593 = vmatmul.msk.f32.vlgmr.msra.gmra.mxu0 %vm321_vm6, %v906_v15 }
 0x15e   :  { %594 = vmatmul.msk.f32.gmra.mxu0 %vm321_vm6, %v940_v35 }
 0x194   :  { %v365_v29 = vpop.permute.xlu2 %364 }
 0x19c   :  { %v483_v53 = vpop.permute.xlu2 %482 }
 0x1af   :  { %v413_v21 = vpop.f32.mrf.mxu3 }
 0x1b7   :  { %v416_v22 = vpop.f32.mrf.mxu3 }
 0x1c5   :  { %v478_v52 = vpop.permute.xlu1 %477 }
 0x1cf   :  { %v390_v23 = vpop.f32.mrf.mxu2  ;;  %v436_v24 = vpop.f32.mrf.mxu3 }
 0x1d0   :  { %v391_v28 = vadd.f32 %v390_v23, %v360_v26  ;;  %v437_v34 = vadd.f32 %v436_v24, %v360_v26 }
 0x1d2   :  { %v414_v35 = vadd.f32 %v413_v21, %v391_v28 }
 0x1d3   :  { %v459_v48 = vpop.f32.mrf.mxu0 }
 0x1d4   :  { %v460_v38 = vadd.f32 %v459_v48, %v437_v34  ;;  %v465_v47 = vmax.f32 %v414_v35, 0.0 }
 0x1d6   :  { %v466_v41 = vmax.f32 %v460_v38, 0.0 }
 0x1d7   :  { %v393_v30 = vpop.f32.mrf.mxu2  ;;  %v439_v32 = vpop.f32.mrf.mxu3 }
 0x1d8   :  { %v394_v33 = vadd.f32 %v393_v30, %v365_v29  ;;  %v440_v15 = vadd.f32 %v439_v32, %v365_v29 }
 0x1da   :  { %v417_v36 = vadd.f32 %v416_v22, %v394_v33 }
 0x1db   :  { %v462_v37 = vpop.f32.mrf.mxu0 }
 0x1dc   :  { %v463_v39 = vadd.f32 %v462_v37, %v440_v15  ;;  %v467_v40 = vmax.f32 %v417_v36, 0.0 }
 0x1de   :  { %v468_v46 = vmax.f32 %v463_v39, 0.0  ;;  %513 = vmatpush.msrb.mxu1 %v467_v40 }
 0x1e0   :  { %514 = vmatpush.msrb.mxu1 %v465_v47  ;;  %539 = vmatpush.msrb.mxu0 %v468_v46 }
 0x1e1   :  { %595 = vmatmul.msk.f32.vlgmr.msrb.gmra.mxu1 %vm321_vm6, %v469_v49 }
 0x1e2   :  { %540 = vmatpush.msrb.mxu0 %v466_v41 }
 0x1e3   :  { %598 = vmatmul.msk.f32.vlgmr.msrb.gmra.mxu0 %vm321_vm6, %v469_v49 }
 0x1e9   :  { %596 = vmatmul.msk.f32.gmra.mxu1 %vm321_vm6, %v470_v50 }
 0x1eb   :  { %599 = vmatmul.msk.f32.gmra.mxu0 %vm321_vm6, %v470_v50 }
 0x1f1   :  { %597 = vmatmul.msk.f32.gmra.mxu1 %vm321_vm6, %v471_v31 }
 0x1f3   :  { %600 = vmatmul.msk.f32.gmra.mxu0 %vm321_vm6, %v471_v31 }
 0x25e   :  { %v516_v25 = vpop.f32.mrf.mxu1 }
 0x25f   :  { %v517_v20 = vadd.f32 %v516_v25, %v478_v52 }
 0x260   :  { %v542_v27 = vpop.f32.mrf.mxu0 }
 0x261   :  { %v543_v42 = vadd.f32 %v542_v27, %v478_v52  ;;  %551 = vst [vmem:[%s1073_s7 + $0x20] sm:$0xff] %v517_v20 }
 0x263   :  { %552 = vst [vmem:[%s1073_s7 + $0x28] sm:$0xff] %v543_v42 }
 0x266   :  { %v519_v54 = vpop.f32.mrf.mxu1 }
 0x267   :  { %v520_v57 = vadd.f32 %v519_v54, %v483_v53 }
 0x268   :  { %v545_v58 = vpop.f32.mrf.mxu0 }
 0x269   :  { %553 = vst [vmem:[%s1073_s7 + $0x30] sm:$0xff] %v520_v57  ;;  %v546_v59 = vadd.f32 %v545_v58, %v483_v53 }
 0x26b   :  { %554 = vst [vmem:[%s1073_s7 + $0x38] sm:$0xff] %v546_v59 }
 0x26e   :  { %v522_v55 = vpop.f32.mrf.mxu1 }
 0x26f   :  { %v523_v43 = vadd.f32 %v522_v55, %v488_v44 }
 0x270   :  { %v548_v61 = vpop.f32.mrf.mxu0 }
 0x271   :  { %555 = vst [vmem:[%s1073_s7 + $0x40] sm:$0x3] %v523_v43  ;;  %v549_v62 = vadd.f32 %v548_v61, %v488_v44 }
 0x273   :  { %556 = vst [vmem:[%s1073_s7 + $0x48] sm:$0x3] %v549_v62 }

// kernel: forward.3
= control target key start
LH: loop header
LB: loop body
LE: loop exit
PB: predicated region body
PF: predicated region fallthrough
CT: control target
= control target key end

     0   :  { %v917_v3 = vmov 0   ;;  %vm283_vm0 = vcmask 1045504   ;;  %vm303_vm1 = vcmask 1043456   ;;  %vm305_vm4 = vcmask 1041408   ;;  %s1329_s0 = inlined_call_operand.vmem [shape: f32[24,128], index: 0, kind: input, shape index: {}]   ;;  %s1330_s1 = inlined_call_operand.vmem [shape: f32[24,128], index: 1, kind: input, shape index: {}]   ;;  %s1331_s2 = inlined_call_operand.vmem [shape: f32[6,128], index: 2, kind: input, shape index: {}]   ;;  %s1332_s3 = inlined_call_operand.vmem [shape: f32[6,128], index: 3, kind: input, shape index: {}]   ;;  %s1333_s4 = inlined_call_operand.vmem [shape: s32[6,128], index: 4, kind: input, shape index: {}]   ;;  %s1334_s5 = inlined_call_operand.vmem [shape: f32[32,64], index: 5, kind: input, shape index: {}]   ;;  %s1335_s6 = inlined_call_operand.vmem [shape: f32[64,32], index: 6, kind: input, shape index: {}]   ;;  %s1336_s7 = inlined_call_operand.vmem [shape: f32[1,32], index: 7, kind: input, shape index: {}]   ;;  %s1337_s8 = inlined_call_operand.vmem [shape: f32[32,25], index: 8, kind: input, shape index: {}]   ;;  %s1338_s9 = inlined_call_operand.vmem [shape: f32[1,25], index: 9, kind: input, shape index: {}]   ;;  %s1339_s10 = inlined_call_operand.vmem [shape: f32[32,4], index: 10, kind: input, shape index: {}]   ;;  %s1340_s11 = inlined_call_operand.vmem [shape: s32[32,1], index: 11, kind: input, shape index: {}]   ;;  %s1341_s12 = inlined_call_operand.vmem [shape: f32[1,4], index: 12, kind: output, shape index: {}]  }
   0x1   :  { %v53_v0 = vld [vmem:[%s1335_s6 + $0x38] sm:$0xff]  ;;  %v52_v1 = vld [vmem:[%s1335_s6 + $0x30] sm:$0xff]  ;;  %v51_v2 = vld [vmem:[%s1335_s6 + $0x28] sm:$0xff]  ;;  %861 = vset.pattern.permute.xlu1 %v917_v3  ;;  %860 = vset.pattern.permute.xlu2 %v917_v3  ;;  %v918_v12 = vmov 0.0  }
   0x2   :  { %79 = vmatpush.msra.mxu0 %v53_v0  ;;  %819 = vmatpush.msra.mxu2 %v53_v0  ;;  %v50_v4 = vld [vmem:[%s1335_s6 + $0x20] sm:$0xff]  ;;  %v308_v8 = vld [vmem:[%s1329_s0 + $0x8] sm:$0xff]  ;;  %v309_v9 = vld [vmem:[%s1329_s0 + $0x10] sm:$0xff] }
   0x3   :  { %v1006_v5 = vld [vmem:[%s1333_s4] sm:$0x3f]  ;;  %862 = vset.pattern.permute.xlu0 %v917_v3  ;;  %v311_v10 = vld [vmem:[%s1330_s1 + $0x8] sm:$0xff]  ;;  %v49_v11 = vld [vmem:[%s1335_s6 + $0x18] sm:$0xff] }
   0x4   :  { %80 = vmatpush.msra.mxu0 %v52_v1  ;;  %820 = vmatpush.msra.mxu2 %v52_v1  ;;  %v307_v6 = vld [vmem:[%s1329_s0] sm:$0xff]  ;;  %vm280_vm2 = vcmp.ge.s32.totalorder %v1006_v5, 0  ;;  %vm277_vm3 = vcmp.gt.s32.totalorder %v1006_v5, 0  ;;  %v312_v16 = vld [vmem:[%s1330_s1 + $0x10] sm:$0xff]  ;;  %v314_v17 = vsub.f32 %v308_v8, %v311_v10 }
   0x5   :  { %v310_v7 = vld [vmem:[%s1330_s1] sm:$0xff]  ;;  %v1029_v13 = vsel %vm280_vm2, 1.0, %v918_v12  ;;  %v791_v15 = vsel %vm277_vm3, 1.0, %v918_v12  ;;  %v48_v22 = vld [vmem:[%s1335_s6 + $0x10] sm:$0xff]  ;;  %v315_v23 = vsub.f32 %v309_v9, %v312_v16 }
   0x6   :  { %81 = vmatpush.msra.mxu0 %v51_v2  ;;  %821 = vmatpush.msra.mxu2 %v51_v2  ;;  %v313_v14 = vsub.f32 %v307_v6, %v310_v7  ;;  %v284_v18 = vsel %vm283_vm0, %v1029_v13, 0.0  ;;  %v296_v19 = vrot.slane %v791_v15, 2  ;;  %v298_v20 = vrot.slane %v791_v15, 4 }
   0x7   :  { %v300_v21 = vrot.slane %v791_v15, 6  ;;  %285 = vadd.xlane.f32.xlu2 %v284_v18 }
   0x8   :  { %82 = vmatpush.msra.mxu0 %v50_v4  ;;  %822 = vmatpush.msra.mxu2 %v50_v4 }
   0x9   :  { %17 = vsyncpa [#allocation3], 0  ;;  %v302_v24 = vsel %vm283_vm0, %v791_v15, %v296_v19  ;;  %v304_v25 = vsel %vm303_vm1, %v296_v19, %v298_v20  ;;  %v306_v26 = vsel %vm305_vm4, %v298_v20, %v300_v21  ;;  %v47_v27 = vld [vmem:[%s1335_s6 + $0x8] sm:$0xff]  ;;  %v46_v31 = vld [vmem:[%s1335_s6] sm:$0xff]  ;;  %vm58_vm5 = vcmask 523264   ;;  %s920_s20 = smov 108  }
   0xa   :  { %83 = vmatpush.msra.mxu0 %v49_v11  ;;  %823 = vmatpush.msra.mxu2 %v49_v11  ;;  %v316_v28 = vmul.f32 %v313_v14, %v302_v24  ;;  %v317_v29 = vmul.f32 %v314_v17, %v304_v25  ;;  %v318_v30 = vmul.f32 %v315_v23, %v306_v26  ;;  %v42_v35 = vld [vmem:[%s1334_s5] sm:$0xff]  ;;  %v44_v36 = vld [vmem:[%s1334_s5 + $0x10] sm:$0xff]  ;;  %v43_v58 = vld [vmem:[%s1334_s5 + $0x8] sm:$0xff]  ;;  %vm395_vm9 = vcmp.eq.s32.totalorder %v1006_v5, 1  ;;  %s921_s21 = smov 112   ;;  %s924_s24 = smov 124  }
   0xb   :  { %v45_v59 = vld [vmem:[%s1334_s5 + $0x18] sm:$0xff]  ;;  %v1071_v1 = vld [vmem:[%s1340_s11] sm:$0xff]  ;;  %v1080_v6 = vld [vmem:[%s1340_s11 + $0x10] sm:$0xff]  ;;  %vm112_vm10 = vcmask 261120   ;;  %vm484_vm14 = vcmask 7168   ;;  %s922_s5 = smov 120  }
   0xc   :  { %84 = vmatpush.msra.mxu0 %v48_v22  ;;  %824 = vmatpush.msra.mxu2 %v48_v22  ;;  %v319_v32 = vand.u32 2147483647, %v316_v28  ;;  %v320_v33 = vand.u32 2147483647, %v317_v29  ;;  %v321_v34 = vand.u32 2147483647, %v318_v30 }
   0xd   :  { %v107_v2 = vld [vmem:[%s1337_s8 + $0x18] sm:$0xff]  ;;  %v160_v3 = vmul.u32 4, %v1071_v1  ;;  %v162_v7 = vmul.u32 4, %v1080_v6  ;;  %v382_v9 = vld [vmem:[%s1331_s2] sm:$0x3f]  ;;  %v106_v26 = vld [vmem:[%s1337_s8 + $0x10] sm:$0xff] }
   0xe   :  { %85 = vmatpush.msra.mxu0 %v47_v27  ;;  %825 = vmatpush.msra.mxu2 %v47_v27  ;;  %vm322_vm6 = vcmp.lt.f32.partialorder %v319_v32, 0.11111111  ;;  %vm323_vm7 = vcmp.lt.f32.partialorder %v320_v33, 0.11111111  ;;  %vm324_vm8 = vcmp.lt.f32.partialorder %v321_v34, 0.11111111 }
   0xf   :  { %v793_v37 = vsel %vm322_vm6, 1.0, %v918_v12  ;;  %v794_v38 = vsel %vm323_vm7, 1.0, %v918_v12  ;;  %v795_v39 = vsel %vm324_vm8, 1.0, %v918_v12  ;;  %v796_v40 = vadd.f32 -0.055555556, %v319_v32  ;;  %137 = vmatpush.msra.mxu1 %v107_v2  ;;  %827 = vmatpush.msra.mxu3 %v107_v2  ;;  %v1100_v5 = vld [vmem:[%s1340_s11 + $0x18] sm:$0xff] }
  0x10   :  { %86 = vmatpush.msra.mxu0 %v46_v31  ;;  %826 = vmatpush.msra.mxu2 %v46_v31  ;;  %v331_v41 = vmul.f32 4.5, %v793_v37  ;;  %v332_v42 = vmul.f32 4.5, %v794_v38  ;;  %v333_v43 = vmul.f32 4.5, %v795_v39  ;;  %v340_v44 = vsub.f32 1.0, %v793_v37  ;;  %v383_v10 = vld [vmem:[%s1332_s3] sm:$0x3f] }
  0x11   :  { %783 = vmatmul.msk.f32.vlgmr.msra.gmra.mxu0 %vm58_vm5, %v42_v35  ;;  %785 = vmatmul.msk.f32.vlgmr.msra.gmra.mxu2 %vm58_vm5, %v44_v36  ;;  %v341_v45 = vsub.f32 1.0, %v794_v38  ;;  %v342_v46 = vsub.f32 1.0, %v795_v39  ;;  %v797_v47 = vadd.f32 -0.055555556, %v320_v33  ;;  %v798_v48 = vadd.f32 -0.055555556, %v321_v34 }
  0x12   :  { %v334_v49 = vmul.f32 %v331_v41, %v316_v28  ;;  %v335_v50 = vmul.f32 %v332_v42, %v317_v29  ;;  %v336_v51 = vmul.f32 %v333_v43, %v318_v30  ;;  %v346_v52 = vmul.f32 %v796_v40, %v340_v44  ;;  %138 = vmatpush.msra.mxu1 %v106_v26  ;;  %v1110_v32 = vld [vmem:[%s1340_s11 + $0x8] sm:$0xff]  ;;  %v873_v35 = vld [vmem:[%s1336_s7] ss:$0 sm:$0xff]  ;;  %s919_s11 = smov 1.0  }
  0x13   :  { %v347_v53 = vmul.f32 %v797_v47, %v341_v45  ;;  %v348_v54 = vmul.f32 %v798_v48, %v342_v46  ;;  %v180_v4 = vadd.s32 4, %v160_v3  ;;  %v182_v8 = vadd.s32 4, %v162_v7  ;;  %828 = vmatpush.msra.mxu3 %v106_v26 }
  0x14   :  { %v337_v55 = vmul.f32 %v334_v49, %v316_v28  ;;  %v338_v56 = vmul.f32 %v335_v50, %v317_v29  ;;  %v339_v57 = vmul.f32 %v336_v51, %v318_v30  ;;  %v384_v11 = vmax.f32 %v382_v9, %v383_v10  ;;  %v105_v28 = vld [vmem:[%s1337_s8 + $0x8] sm:$0xff] }
  0x15   :  { %v396_v24 = vsel %vm395_vm9, %v383_v10, %v382_v9  ;;  %139 = vmatpush.msra.mxu1 %v105_v28  ;;  %v163_v30 = vmul.u32 4, %v1100_v5  ;;  %829 = vmatpush.msra.mxu3 %v105_v28  ;;  %v161_v33 = vmul.u32 4, %v1110_v32  ;;  %vm440_vm11 = vcmp.ge.s32.totalorder %v1071_v1, 0 }
  0x16   :  { %v349_v60 = vadd.f32 %v346_v52, %v337_v55  ;;  %v350_v61 = vadd.f32 %v347_v53, %v338_v56  ;;  %v351_v62 = vadd.f32 %v348_v54, %v339_v57  ;;  %v385_v14 = vsub.f32 %v382_v9, %v384_v11 }
  0x17   :  { %v388_v15 = vsub.f32 %v383_v10, %v384_v11  ;;  %v183_v31 = vadd.s32 4, %v163_v30  ;;  %v181_v34 = vadd.s32 4, %v161_v33  ;;  %vm441_vm12 = vcmp.ge.s32.totalorder %v1110_v32, 0 }
  0x18   :  { %v352_v63 = vadd.f32 %v350_v61, %v349_v60  ;;  %v386_v16 = vmul.f32 1.442695, %v385_v14  ;;  %vm442_vm13 = vcmp.ge.s32.totalorder %v1080_v6, 0  ;;  %v803_v55 = vsel %vm440_vm11, 1.0, %v918_v12 }
  0x19   :  { %784 = vmatmul.msk.f32.gmra.mxu0 %vm58_vm5, %v43_v58  ;;  %786 = vmatmul.msk.f32.gmra.mxu2 %vm58_vm5, %v45_v59  ;;  %v389_v17 = vmul.f32 1.442695, %v388_v15  ;;  %v804_v56 = vsel %vm441_vm12, 1.0, %v918_v12  ;;  %v805_v57 = vsel %vm442_vm13, 1.0, %v918_v12  ;;  %vm443_vm15 = vcmp.ge.s32.totalorder %v1100_v5, 0 }
  0x1a   :  { %v353_v0 = vadd.f32 %v352_v63, %v351_v62  ;;  %875 = vpow2.f32 %v386_v16  ;;  %v485_v58 = vsel %vm484_vm14, %v803_v55, 0.0  ;;  %v486_v59 = vsel %vm484_vm14, %v804_v56, 0.0 }
  0x1b   :  { %877 = vpow2.f32 %v389_v17  ;;  %v487_v60 = vadd.f32 %v486_v59, %v485_v58  ;;  %v488_v61 = vsel %vm484_vm14, %v805_v57, 0.0  ;;  %v806_v62 = vsel %vm443_vm15, 1.0, %v918_v12 }
  0x1c   :  { %354 = vadd.xlane.f32.xlu1 %v353_v0  ;;  %vm582_vm13 = vcmask 203936  }
  0x1d   :  { %v489_v2 = vadd.f32 %v488_v61, %v487_v60 }
  0x1f   :  { %165 = vperm.xlu2 %860, %v160_v3   ;;  %v490_v3 = vsel %vm484_vm14, %v806_v62, 0.0 }
  0x20   :  { %v876_v18 = vpop.eup %875 }
  0x21   :  { %v878_v19 = vpop.eup %877 }
  0x22   :  { %v391_v20 = vadd.f32 %v878_v19, %v876_v18 }
  0x24   :  { %879 = vlog2.f32 %v391_v20 }
  0x27   :  { %188 = vperm.xlu2 %860, %v181_v34  }
  0x2a   :  { %v880_v21 = vpop.eup %879 }
  0x2b   :  { %v393_v22 = vmul.f32 0.6931472, %v880_v21 }
  0x2d   :  { %v394_v23 = vadd.f32 %v393_v22, %v384_v11 }
  0x2f   :  { %v397_v25 = vsub.f32 %v394_v23, %v396_v24  ;;  %171 = vperm.xlu2 %860, %v162_v7   ;;  %v491_v7 = vadd.f32 %v490_v3, %v489_v2 }
  0x31   :  { %v398_v27 = vmul.f32 %v1029_v13, %v397_v25  ;;  %v104_v13 = vld [vmem:[%s1337_s8] sm:$0xff] }
  0x32   :  { %140 = vmatpush.msra.mxu1 %v104_v13  ;;  %830 = vmatpush.msra.mxu3 %v104_v13 }
  0x33   :  { %v399_v29 = vsel %vm283_vm0, %v398_v27, 0.0 }
  0x34   :  { %400 = vadd.xlane.f32.xlu0 %v399_v29 }
  0x35   :  { %185 = vperm.xlu1 %861, %v180_v4  }
  0x37   :  { %174 = vperm.xlu2 %860, %v163_v30  }
  0x3d   :  { %191 = vperm.xlu1 %861, %v182_v8  }
  0x3f   :  { %649 = vperm.xlu2 %860, %v1071_v1  }
  0x45   :  { %194 = vperm.xlu1 %861, %v183_v31   ;;  %v158_v31 = vlaneseq }
  0x47   :  { %658 = vperm.xlu2 %860, %v1100_v5  }
  0x48   :  { %168 = vperm.xlu0 %862, %v161_v33   ;;  %v1137_v33 = vand.u32 127, %v158_v31 }
  0x4d   :  { %652 = vperm.xlu1 %861, %v1110_v32  }
  0x55   :  { %655 = vperm.xlu1 %861, %v1080_v6  }
  0x70   :  { %492 = vadd.xlane.f32.xlu2 %v491_v7 }
  0x7a   :  { %v286_v36 = vpop.xlane.xlu2 %285 }
  0x7b   :  { %v287_v37 = vrot.slane %v286_v36, 4 }
  0x7d   :  { %v288_v39 = vadd.f32 %v287_v37, %v286_v36  ;;  %v874_v36 = vld [vmem:[%s1338_s9] ss:$0 sm:$0xff]  ;;  %s923_s9 = smov 116  }
  0x7f   :  { %v289_v41 = vrot.slane %v288_v39, 2 }
  0x81   :  { %v290_v43 = vadd.f32 %v289_v41, %v288_v39 }
  0x82   :  { %v166_v34 = vpop.permute.xlu2 %165 }
  0x83   :  { %v291_v44 = vrot.slane %v290_v43, 1  ;;  %vm176_vm4 = vcmp.ge.s32.totalorder %v1137_v33, %v166_v34 }
  0x85   :  { %v292_v47 = vadd.f32 %v291_v44, %v290_v43 }
  0x87   :  { %831 = vpush %v292_v47 }
  0x8a   :  { %v189_v41 = vpop.permute.xlu2 %188 }
  0x8b   :  { %vm197_vm7 = vcmp.lt.s32.totalorder %v1137_v33, %v189_v41 }
  0x8e   :  { %v88_v38 = vpop.f32.mrf.mxu0 }
  0x8f   :  { %v89_v40 = vadd.f32 %v873_v35, %v88_v38  ;;  %v355_v63 = vpop.xlane.xlu1 %354 }
  0x90   :  { %v356_v0 = vrot.slane %v355_v63, 4 }
  0x91   :  { %v100_v42 = vmax.f32 %v89_v40, 0.0 }
  0x92   :  { %v357_v4 = vadd.f32 %v356_v0, %v355_v63 }
  0x93   :  { %787 = vmatmul.msk.f32.vlgmr.msra.gmra.mxu1 %vm112_vm10, %v100_v42 }
  0x94   :  { %v94_v46 = vpop.f32.mrf.mxu2  ;;  %v358_v8 = vrot.slane %v357_v4, 2 }
  0x95   :  { %v95_v50 = vadd.f32 %v873_v35, %v94_v46  ;;  %v172_v46 = vpop.permute.xlu2 %171 }
  0x96   :  { %v91_v45 = vpop.f32.mrf.mxu0  ;;  %v359_v9 = vadd.f32 %v358_v8, %v357_v4 }
  0x97   :  { %v92_v48 = vadd.f32 %v873_v35, %v91_v45  ;;  %v102_v51 = vmax.f32 %v95_v50, 0.0 }
  0x98   :  { %v360_v11 = vrot.slane %v359_v9, 1 }
  0x99   :  { %v101_v49 = vmax.f32 %v92_v48, 0.0 }
  0x9a   :  { %v361_v14 = vadd.f32 %v360_v11, %v359_v9 }
  0x9b   :  { %788 = vmatmul.msk.f32.vlgmr.msra.gmra.mxu3 %vm112_vm10, %v101_v49 }
  0x9c   :  { %v97_v52 = vpop.f32.mrf.mxu2  ;;  %833 = vpush %v361_v14 }
  0x9d   :  { %v98_v53 = vadd.f32 %v873_v35, %v97_v52 }
  0x9f   :  { %v103_v54 = vmax.f32 %v98_v53, 0.0 }
  0xa3   :  { %789 = vmatmul.msk.f32.gmra.mxu3 %vm112_vm10, %v102_v51  ;;  %v175_v51 = vpop.permute.xlu2 %174 }
  0xa7   :  { %v401_v25 = vpop.xlane.xlu0 %400  ;;  %v186_v35 = vpop.permute.xlu1 %185 }
  0xa8   :  { %v402_v26 = vrot.slane %v401_v25, 4  ;;  %vm196_vm5 = vcmp.lt.s32.totalorder %v1137_v33, %v186_v35 }
  0xa9   :  { %vm200_vm6 = vmand %vm176_vm4, %vm196_vm5  ;;  %vm428_vm4 = vcmp.gt.s32.totalorder %v1071_v1, 0  ;;  %vm429_vm5 = vcmp.gt.s32.totalorder %v1110_v32, 0 }
  0xaa   :  { %v403_v27 = vadd.f32 %v402_v26, %v401_v25  ;;  %v799_v26 = vsel %vm428_vm4, 1.0, %v918_v12  ;;  %vm699_vm4 = vcmp.ne.s32.totalorder %v1100_v5, 4294967196 }
  0xab   :  { %790 = vmatmul.msk.f32.gmra.mxu3 %vm112_vm10, %v103_v54  ;;  %vm178_vm10 = vcmp.ge.s32.totalorder %v1137_v33, %v172_v46  ;;  %v650_v53 = vpop.permute.xlu2 %649 }
  0xac   :  { %v404_v28 = vrot.slane %v403_v27, 2 }
  0xae   :  { %v405_v29 = vadd.f32 %v404_v28, %v403_v27  ;;  %v800_v27 = vsel %vm429_vm5, 1.0, %v918_v12 }
  0xaf   :  { %v192_v47 = vpop.permute.xlu1 %191  ;;  %v863_v28 = vpack.i.bf16 %v800_v27, %v799_v26 }
  0xb0   :  { %v406_v30 = vrot.slane %v405_v29, 1  ;;  %vm198_vm11 = vcmp.lt.s32.totalorder %v1137_v33, %v192_v47 }
  0xb1   :  { %vm202_vm12 = vmand %vm178_vm10, %vm198_vm11 }
  0xb2   :  { %v407_v13 = vadd.f32 %v406_v30, %v405_v29 }
  0xb3   :  { %v1181_v54 = vpop.permute.xlu2 %658 }
  0xb7   :  { %v195_v59 = vpop.permute.xlu1 %194 }
  0xb8   :  { %s832_s7 = spop %831 }
  0xb9   :  { %s294_s6 = smax.f32 %s919_s11, %s832_s7 }
  0xba   :  { %v363_v10 = vstv %s294_s6  ;;  %v169_v40 = vpop.permute.xlu0 %168 }
  0xbb   :  { %881 = vrcp.f32 %v363_v10  ;;  %v375_v17 = vand.u32 2147483648, %v363_v10  ;;  %vm369_vm0 = vweird.f32 %v363_v10  ;;  %v373_v19 = vand.u32 2147483647, %v363_v10 }
  0xbc   :  { %vm177_vm8 = vcmp.ge.s32.totalorder %v1137_v33, %v169_v40 }
  0xbd   :  { %v376_v21 = vor.u32 1.1754944e-38, %v375_v17  ;;  %vm374_vm3 = vcmp.eq.f32.partialorder %v373_v19, 8.507059e+37  ;;  %vm201_vm9 = vmand %vm177_vm8, %vm197_vm7  ;;  %vm663_vm7 = vcmp.eq.s32.totalorder %v1137_v33, %v1181_v54  ;;  %vm430_vm8 = vcmp.gt.s32.totalorder %v1080_v6, 0 }
  0xbe   :  { %v801_v54 = vsel %vm430_vm8, 1.0, %v918_v12 }
  0xbf   :  { %v653_v62 = vpop.permute.xlu1 %652 }
  0xc0   :  { %vm661_vm15 = vcmp.eq.s32.totalorder %v1137_v33, %v653_v62 }
  0xc1   :  { %v882_v15 = vpop.eup %881 }
  0xc2   :  { %v365_v16 = vmul.f32 %v882_v15, %v363_v10  ;;  %vm370_vm1 = vweird.f32 %v882_v15 }
  0xc3   :  { %vm371_vm2 = vmor %vm369_vm0, %vm370_vm1  ;;  %vm660_vm0 = vcmp.eq.s32.totalorder %v1137_v33, %v650_v53  ;;  %vm179_vm1 = vcmp.ge.s32.totalorder %v1137_v33, %v175_v51 }
  0xc4   :  { %v366_v18 = vsub.f32 1.0, %v365_v16 }
  0xc6   :  { %v367_v20 = vmul.f32 %v882_v15, %v366_v18 }
  0xc7   :  { %v1206_v7 = vpop.permute.xlu1 %655 }
  0xc8   :  { %v368_v22 = vadd.f32 %v882_v15, %v367_v20 }
  0xca   :  { %v372_v23 = vsel %vm371_vm2, %v882_v15, %v368_v22  ;;  %vm199_vm2 = vcmp.lt.s32.totalorder %v1137_v33, %v195_v59 }
  0xcb   :  { %v377_v24 = vsel %vm374_vm3, %v376_v21, %v372_v23  ;;  %vm203_vm3 = vmand %vm179_vm1, %vm199_vm2  ;;  %vm696_vm1 = vcmp.ne.s32.totalorder %v1071_v1, 4294967196  ;;  %vm698_vm2 = vcmp.ne.s32.totalorder %v1080_v6, 4294967196  ;;  %v818_v1 = vsel %vm699_vm4, 1.0, %v918_v12 }
  0xcc   :  { %835 = vpush %v377_v24 }
  0xcd   :  { %837 = vpush %v407_v13  ;;  %s834_s16 = spop %833 }
  0xe3   :  { %v1183_v55 = vpop.xlane.xlu2 %492 }
  0xe4   :  { %v494_v47 = vrot.slane %v1183_v55, 4 }
  0xfd   :  { %s836_s18 = spop %835 }
  0xfe   :  { %s379_s19 = smul.f32 %s836_s18, %s834_s16  ;;  %s838_s22 = spop %837 }
  0xff   :  { %s425_s23 = smul.f32 %s838_s22, %s836_s18  ;;  %s925_s18 = smov [#allocation2]  }
 0x100   :  { %381 = sst [smem:[#allocation2]] %s379_s19 }
 0x101   :  { %427 = sst [smem:[#allocation2 + $0x1]] %s425_s23 }
 0x110   :  { %v142_v37 = vpop.f32.mrf.mxu1 }
 0x111   :  { %v1144_v38 = vadd.f32 %v874_v36, %v142_v37 }
 0x113   :  { %668 = vrot.lane.b32.xlu0 %v1144_v38, %s920_s20  ;;  %v1149_v39 = vsel %vm200_vm6, %v1144_v38, 0.0  ;;  %v583_v50 = vsel %vm582_vm13, %v1144_v38, -inf  ;;  %vm623_vm6 = vcmask 39936  }
 0x114   :  { %260 = vrot.lane.b32.xlu1 %v1149_v39, %s921_s21  ;;  %228 = vrot.lane.b32.xlu2 %v1149_v39, %s922_s5 }
 0x11c   :  { %244 = vrot.lane.b32.xlu2 %v1149_v39, %s923_s9 }
 0x11e   :  { %v145_v42 = vpop.f32.mrf.mxu3 }
 0x11f   :  { %v1159_v43 = vadd.f32 %v874_v36, %v145_v42 }
 0x121   :  { %v1162_v44 = vsel %vm201_vm9, %v1159_v43, 0.0  ;;  %v586_v61 = vsel %vm582_vm13, %v1159_v43, -inf  ;;  %vm431_vm9 = vcmp.gt.s32.totalorder %v1100_v5, 0 }
 0x122   :  { %246 = vrot.lane.b32.xlu1 %v1162_v44, %s923_s9 }
 0x124   :  { %670 = vrot.lane.b32.xlu2 %v1159_v43, %s920_s20 }
 0x126   :  { %v148_v45 = vpop.f32.mrf.mxu3 }
 0x127   :  { %v149_v48 = vadd.f32 %v874_v36, %v148_v45 }
 0x129   :  { %v1172_v49 = vsel %vm202_vm12, %v149_v48, 0.0  ;;  %v589_v52 = vsel %vm582_vm13, %v149_v48, -inf  ;;  %vm546_vm12 = vcmask 31744  }
 0x12c   :  { %214 = vrot.lane.b32.xlu2 %v1162_v44, %s924_s24 }
 0x12e   :  { %v151_v56 = vpop.f32.mrf.mxu3 }
 0x12f   :  { %v1187_v57 = vadd.f32 %v874_v36, %v151_v56 }
 0x131   :  { %v592_v4 = vsel %vm582_vm13, %v1187_v57, -inf  ;;  %v1213_v8 = vsel %vm203_vm3, %v1187_v57, 0.0  ;;  %vm662_vm13 = vcmp.eq.s32.totalorder %v1137_v33, %v1206_v7  ;;  %v454_v33 = vld [vmem:[%s1339_s10 + $0x10] sm:$0xff]  ;;  %v455_v7 = vld [vmem:[%s1339_s10 + $0x18] sm:$0xff]  ;;  %vm697_vm3 = vcmp.ne.s32.totalorder %v1110_v32, 4294967196 }
 0x134   :  { %248 = vrot.lane.b32.xlu2 %v1172_v49, %s923_s9 }
 0x13d   :  { %584 = vmax.xlane.f32.xlu0 %v583_v50 }
 0x14c   :  { %590 = vmax.xlane.f32.xlu1 %v589_v52 }
 0x151   :  { %212 = vrot.lane.b32.xlu0 %v1149_v39, %s924_s24 }
 0x165   :  { %216 = vrot.lane.b32.xlu1 %v1172_v49, %s924_s24 }
 0x16d   :  { %674 = vrot.lane.b32.xlu1 %v1187_v57, %s920_s20 }
 0x16e   :  { %v229_v58 = vpop.permute.xlu2 %228 }
 0x176   :  { %v245_v60 = vpop.permute.xlu2 %244 }
 0x17b   :  { %587 = vmax.xlane.f32.xlu0 %v586_v61 }
 0x17e   :  { %v671_v63 = vpop.permute.xlu2 %670 }
 0x17f   :  { %v1194_v0 = vsel %vm661_vm15, %v671_v63, 0.0 }
 0x185   :  { %v669_v2 = vpop.permute.xlu0 %668 }
 0x186   :  { %v1197_v3 = vsel %vm660_vm0, %v669_v2, 0.0  ;;  %v261_v9 = vpop.permute.xlu1 %260  ;;  %v215_v35 = vpop.permute.xlu2 %214 }
 0x187   :  { %v225_v36 = vadd.f32 %v215_v35, %v1162_v44 }
 0x18f   :  { %230 = vrot.lane.b32.xlu0 %v1162_v44, %s922_s5 }
 0x194   :  { %v247_v15 = vpop.permute.xlu1 %246 }
 0x197   :  { %593 = vmax.xlane.f32.xlu1 %v592_v4  ;;  %262 = vrot.lane.b32.xlu0 %v1162_v44, %s921_s21  ;;  %v495_v44 = vadd.f32 %v494_v47, %v1183_v55 }
 0x199   :  { %v496_v51 = vrot.slane %v495_v44, 2 }
 0x19f   :  { %672 = vrot.lane.b32.xlu0 %v149_v48, %s920_s20 }
 0x1a7   :  { %232 = vrot.lane.b32.xlu0 %v1172_v49, %s922_s5 }
 0x1af   :  { %234 = vrot.lane.b32.xlu0 %v1213_v8, %s922_s5 }
 0x1b0   :  { %v1217_v10 = vpop.xlane.xlu0 %584  ;;  %218 = vrot.lane.b32.xlu1 %v1213_v8, %s924_s24 }
 0x1b1   :  { %v595_v11 = vsub.f32 %v1144_v38, %v1217_v10 }
 0x1b3   :  { %v599_v14 = vmul.f32 1.442695, %v595_v11 }
 0x1b5   :  { %883 = vpow2.f32 %v599_v14 }
 0x1b8   :  { %264 = vrot.lane.b32.xlu1 %v1172_v49, %s921_s21 }
 0x1bb   :  { %v884_v16 = vpop.eup %883 }
 0x1bc   :  { %611 = vrot.lane.b32.xlu0 %v884_v16, %s920_s20 }
 0x1bf   :  { %v1226_v17 = vpop.xlane.xlu1 %590 }
 0x1c0   :  { %v597_v18 = vsub.f32 %v149_v48, %v1226_v17 }
 0x1c2   :  { %v603_v19 = vmul.f32 1.442695, %v597_v18 }
 0x1c3   :  { %v213_v20 = vpop.permute.xlu0 %212 }
 0x1c4   :  { %885 = vpow2.f32 %v603_v19  ;;  %v224_v21 = vadd.f32 %v213_v20, %v1149_v39  ;;  %v453_v19 = vld [vmem:[%s1339_s10 + $0x8] sm:$0xff]  ;;  %v452_v20 = vld [vmem:[%s1339_s10] sm:$0xff] }
 0x1c6   :  { %v240_v22 = vadd.f32 %v229_v58, %v224_v21  ;;  %v249_v58 = vpop.permute.xlu2 %248 }
 0x1c8   :  { %v256_v23 = vadd.f32 %v245_v60, %v240_v22  ;;  %v497_v60 = vadd.f32 %v496_v51, %v495_v44  ;;  %v802_v22 = vsel %vm431_vm9, 1.0, %v918_v12 }
 0x1ca   :  { %v886_v24 = vpop.eup %885  ;;  %v1230_v25 = vadd.f32 %v261_v9, %v256_v23 }
 0x1cb   :  { %615 = vrot.lane.b32.xlu1 %v886_v24, %s920_s20 }
 0x1cc   :  { %v456_v27 = vsub.f32 %v1230_v25, %v452_v20 }
 0x1d3   :  { %266 = vrot.lane.b32.xlu1 %v1213_v8, %s921_s21 }
 0x1d7   :  { %v217_v31 = vpop.permute.xlu1 %216 }
 0x1d8   :  { %v226_v52 = vadd.f32 %v217_v31, %v1172_v49 }
 0x1db   :  { %864 = vperm.xlu1 %861, %v863_v28  }
 0x1df   :  { %v675_v38 = vpop.permute.xlu1 %674 }
 0x1e0   :  { %v683_v16 = vsel %vm663_vm7, %v675_v38, 0.0 }
 0x1e1   :  { %v693_v18 = vsel %vm623_vm6, %v683_v16, 0.0 }
 0x1ee   :  { %v1239_v29 = vpop.xlane.xlu0 %587 }
 0x1ef   :  { %v596_v30 = vsub.f32 %v1159_v43, %v1239_v29 }
 0x1f1   :  { %v601_v13 = vmul.f32 1.442695, %v596_v30 }
 0x1f3   :  { %887 = vpow2.f32 %v601_v13  ;;  %v868_v13 = vpack.i.bf16 %v802_v22, %v801_v54 }
 0x1f9   :  { %v888_v34 = vpop.eup %887 }
 0x1fa   :  { %613 = vrot.lane.b32.xlu2 %v888_v34, %s920_s20 }
 0x201   :  { %v231_v37 = vpop.permute.xlu0 %230 }
 0x202   :  { %v241_v39 = vadd.f32 %v231_v37, %v225_v36  ;;  %250 = vrot.lane.b32.xlu2 %v1213_v8, %s923_s9 }
 0x204   :  { %v257_v40 = vadd.f32 %v247_v15, %v241_v39 }
 0x209   :  { %v263_v41 = vpop.permute.xlu0 %262 }
 0x20a   :  { %v273_v42 = vadd.f32 %v263_v41, %v257_v40  ;;  %v1247_v45 = vpop.xlane.xlu1 %593 }
 0x20b   :  { %v598_v43 = vsub.f32 %v1187_v57, %v1247_v45  ;;  %v498_v57 = vrot.slane %v497_v60, 1 }
 0x20c   :  { %v457_v23 = vsub.f32 %v273_v42, %v453_v19 }
 0x20d   :  { %v605_v46 = vmul.f32 1.442695, %v598_v43  ;;  %v499_v61 = vadd.f32 %v498_v57, %v497_v60 }
 0x20f   :  { %889 = vpow2.f32 %v605_v46  ;;  %839 = vpush %v499_v61 }
 0x211   :  { %v1252_v48 = vpop.permute.xlu0 %672 }
 0x212   :  { %v682_v61 = vsel %vm662_vm13, %v1252_v48, 0.0 }
 0x215   :  { %v890_v50 = vpop.eup %889 }
 0x216   :  { %617 = vrot.lane.b32.xlu0 %v890_v50, %s920_s20 }
 0x219   :  { %v233_v53 = vpop.permute.xlu0 %232 }
 0x21a   :  { %v242_v56 = vadd.f32 %v233_v53, %v226_v52 }
 0x21c   :  { %v258_v59 = vadd.f32 %v249_v58, %v242_v56  ;;  %v684_v58 = vsel %vm623_vm6, %v1197_v3, 0.0  ;;  %v687_v3 = vsel %vm623_vm6, %v1194_v0, 0.0 }
 0x221   :  { %v235_v2 = vpop.permute.xlu0 %234 }
 0x222   :  { %v219_v62 = vpop.permute.xlu1 %218 }
 0x223   :  { %v227_v63 = vadd.f32 %v219_v62, %v1213_v8  ;;  %v690_v62 = vsel %vm623_vm6, %v682_v61, 0.0 }
 0x225   :  { %v1258_v4 = vadd.f32 %v235_v2, %v227_v63 }
 0x22a   :  { %v265_v55 = vpop.permute.xlu1 %264 }
 0x22b   :  { %v1260_v9 = vadd.f32 %v265_v55, %v258_v59 }
 0x22e   :  { %v612_v11 = vpop.permute.xlu0 %611 }
 0x22f   :  { %v624_v15 = vsel %vm623_vm6, %v612_v11, 0.0 }
 0x23d   :  { %v616_v14 = vpop.permute.xlu1 %615 }
 0x23e   :  { %v630_v49 = vsel %vm623_vm6, %v616_v14, 0.0 }
 0x23f   :  { %631 = vadd.xlane.f32.xlu1 %v630_v49 }
 0x240   :  { %625 = vadd.xlane.f32.xlu0 %v624_v15  ;;  %v458_v15 = vsub.f32 %v1260_v9, %v454_v33  ;;  %s840_s10 = spop %839 }
 0x241   :  { %s501_s29 = smax.f32 %s919_s11, %s840_s10 }
 0x245   :  { %v267_v8 = vpop.permute.xlu1 %266 }
 0x247   :  { %694 = vadd.xlane.f32.xlu1 %v693_v18 }
 0x24d   :  { %v865_v21 = vpop.permute.xlu1 %864 }
 0x24e   :  { %v867_v24 = vunpack.i.h.bf16 %v865_v21  ;;  %v866_v26 = vunpack.i.l.bf16 %v865_v21 }
 0x250   :  { %v480_v28 = vmul.f32 %v866_v26, %v456_v27  ;;  %v481_v30 = vmul.f32 %v867_v24, %v457_v23 }
 0x252   :  { %v502_v31 = vand.u32 2147483647, %v480_v28  ;;  %v503_v34 = vand.u32 2147483647, %v481_v30 }
 0x254   :  { %vm506_vm10 = vcmp.lt.f32.partialorder %v502_v31, 1.0  ;;  %vm507_vm11 = vcmp.lt.f32.partialorder %v503_v34, 1.0  ;;  %v614_v35 = vpop.permute.xlu2 %613  ;;  %869 = vperm.xlu0 %862, %v868_v13   ;;  %v811_v46 = vadd.f32 -0.5, %v502_v31  ;;  %v812_v47 = vadd.f32 -0.5, %v503_v34 }
 0x255   :  { %v807_v36 = vsel %vm506_vm10, 1.0, %v918_v12  ;;  %v808_v37 = vsel %vm507_vm11, 1.0, %v918_v12  ;;  %v627_v38 = vsel %vm623_vm6, %v614_v35, 0.0 }
 0x256   :  { %v518_v39 = vmul.f32 0.5, %v807_v36  ;;  %v519_v40 = vmul.f32 0.5, %v808_v37  ;;  %v530_v41 = vsub.f32 1.0, %v807_v36  ;;  %v531_v42 = vsub.f32 1.0, %v808_v37  ;;  %628 = vadd.xlane.f32.xlu2 %v627_v38 }
 0x258   :  { %v522_v25 = vmul.f32 %v518_v39, %v480_v28  ;;  %v523_v43 = vmul.f32 %v519_v40, %v481_v30  ;;  %v538_v51 = vmul.f32 %v811_v46, %v530_v41  ;;  %v539_v52 = vmul.f32 %v812_v47, %v531_v42 }
 0x259   :  { %v815_v42 = vsel %vm696_vm1, 1.0, %v918_v12  ;;  %v817_v47 = vsel %vm698_vm2, 1.0, %v918_v12 }
 0x25a   :  { %v526_v44 = vmul.f32 %v522_v25, %v480_v28  ;;  %v527_v50 = vmul.f32 %v523_v43, %v481_v30  ;;  %v732_v25 = vsel %vm484_vm14, %v815_v42, 0.0  ;;  %v816_v43 = vsel %vm697_vm3, 1.0, %v918_v12 }
 0x25b   :  { %v733_v46 = vsel %vm484_vm14, %v816_v43, 0.0 }
 0x25c   :  { %v542_v53 = vadd.f32 %v538_v51, %v526_v44  ;;  %v543_v56 = vadd.f32 %v539_v52, %v527_v50  ;;  %v251_v55 = vpop.permute.xlu2 %250  ;;  %v734_v44 = vadd.f32 %v733_v46, %v732_v25  ;;  %v735_v50 = vsel %vm484_vm14, %v817_v47, 0.0 }
 0x25d   :  { %v259_v14 = vadd.f32 %v251_v55, %v1258_v4  ;;  %v737_v52 = vsel %vm484_vm14, %v818_v1, 0.0 }
 0x25e   :  { %685 = vadd.xlane.f32.xlu2 %v684_v58  ;;  %v547_v59 = vsel %vm546_vm12, %v542_v53, 0.0  ;;  %v548_v60 = vsel %vm546_vm12, %v543_v56, 0.0  ;;  %v736_v51 = vadd.f32 %v735_v50, %v734_v44 }
 0x25f   :  { %v549_v57 = vadd.f32 %v548_v60, %v547_v59  ;;  %v275_v49 = vadd.f32 %v267_v8, %v259_v14 }
 0x260   :  { %v738_v53 = vadd.f32 %v737_v52, %v736_v51 }
 0x261   :  { %v459_v16 = vsub.f32 %v275_v49, %v455_v7 }
 0x27e   :  { %691 = vadd.xlane.f32.xlu0 %v690_v62 }
 0x288   :  { %v618_v63 = vpop.permute.xlu0 %617 }
 0x289   :  { %v633_v2 = vsel %vm623_vm6, %v618_v63, 0.0 }
 0x28a   :  { %634 = vadd.xlane.f32.xlu2 %v633_v2 }
 0x292   :  { %688 = vadd.xlane.f32.xlu2 %v687_v3 }
 0x2b2   :  { %v632_v32 = vpop.xlane.xlu1 %631 }
 0x2b3   :  { %v626_v11 = vpop.xlane.xlu0 %625 }
 0x2b4   :  { %891 = vlog2.f32 %v626_v11 }
 0x2b5   :  { %893 = vlog2.f32 %v632_v32 }
 0x2ba   :  { %v892_v58 = vpop.eup %891 }
 0x2bb   :  { %v894_v59 = vpop.eup %893  ;;  %v637_v60 = vmul.f32 0.6931472, %v892_v58 }
 0x2bc   :  { %v641_v61 = vmul.f32 0.6931472, %v894_v59 }
 0x2be   :  { %v646_v3 = vadd.f32 %v641_v61, %v1226_v17 }
 0x2c6   :  { %v870_v48 = vpop.permute.xlu0 %869 }
 0x2c7   :  { %v872_v18 = vunpack.i.h.bf16 %v870_v48  ;;  %v871_v0 = vunpack.i.l.bf16 %v870_v48 }
 0x2c9   :  { %v483_v19 = vmul.f32 %v872_v18, %v459_v16  ;;  %v482_v20 = vmul.f32 %v871_v0, %v458_v15  ;;  %v629_v6 = vpop.xlane.xlu2 %628  ;;  %v695_v16 = vpop.xlane.xlu1 %694 }
 0x2ca   :  { %895 = vlog2.f32 %v629_v6 }
 0x2cb   :  { %v505_v21 = vand.u32 2147483647, %v483_v19  ;;  %v504_v54 = vand.u32 2147483647, %v482_v20 }
 0x2cd   :  { %vm509_vm15 = vcmp.lt.f32.partialorder %v505_v21, 1.0  ;;  %vm508_vm0 = vcmp.lt.f32.partialorder %v504_v54, 1.0  ;;  %v813_v9 = vadd.f32 -0.5, %v504_v54  ;;  %v814_v30 = vadd.f32 -0.5, %v505_v21 }
 0x2ce   :  { %v810_v4 = vsel %vm509_vm15, 1.0, %v918_v12  ;;  %v809_v8 = vsel %vm508_vm0, 1.0, %v918_v12  ;;  %v644_v12 = vadd.f32 %v637_v60, %v1217_v10 }
 0x2cf   :  { %v521_v22 = vmul.f32 0.5, %v810_v4  ;;  %v520_v23 = vmul.f32 0.5, %v809_v8  ;;  %v532_v24 = vsub.f32 1.0, %v809_v8  ;;  %v533_v26 = vsub.f32 1.0, %v810_v4 }
 0x2d1   :  { %v525_v27 = vmul.f32 %v521_v22, %v483_v19  ;;  %v524_v28 = vmul.f32 %v520_v23, %v482_v20  ;;  %v540_v34 = vmul.f32 %v813_v9, %v532_v24  ;;  %v541_v35 = vmul.f32 %v814_v30, %v533_v26  ;;  %v686_v56 = vpop.xlane.xlu2 %685 }
 0x2d2   :  { %v708_v2 = vsub.f32 %v644_v12, %v686_v56 }
 0x2d3   :  { %v528_v13 = vmul.f32 %v524_v28, %v482_v20  ;;  %v529_v31 = vmul.f32 %v525_v27, %v483_v19 }
 0x2d4   :  { %v712_v7 = vmul.f32 %v815_v42, %v708_v2 }
 0x2d5   :  { %v544_v36 = vadd.f32 %v540_v34, %v528_v13  ;;  %v545_v37 = vadd.f32 %v541_v35, %v529_v31 }
 0x2d6   :  { %v716_v10 = vsel %vm484_vm14, %v712_v7, 0.0 }
 0x2d7   :  { %v550_v38 = vsel %vm546_vm12, %v544_v36, 0.0  ;;  %v552_v40 = vsel %vm546_vm12, %v545_v37, 0.0 }
 0x2d8   :  { %v551_v39 = vadd.f32 %v550_v38, %v549_v57  ;;  %v896_v57 = vpop.eup %895 }
 0x2d9   :  { %v639_v62 = vmul.f32 0.6931472, %v896_v57 }
 0x2da   :  { %v553_v41 = vadd.f32 %v552_v40, %v551_v39 }
 0x2db   :  { %v645_v11 = vadd.f32 %v639_v62, %v1239_v29 }
 0x2dc   :  { %554 = vadd.xlane.f32.xlu2 %v553_v41 }
 0x2e4   :  { %739 = vadd.xlane.f32.xlu2 %v738_v53 }
 0x2f1   :  { %v692_v63 = vpop.xlane.xlu0 %691 }
 0x2f2   :  { %v710_v14 = vsub.f32 %v646_v3, %v692_v63 }
 0x2f4   :  { %v714_v18 = vmul.f32 %v817_v47, %v710_v14 }
 0x2f6   :  { %v719_v54 = vsel %vm484_vm14, %v714_v18, 0.0 }
 0x2fd   :  { %v635_v5 = vpop.xlane.xlu2 %634 }
 0x2fe   :  { %897 = vlog2.f32 %v635_v5 }
 0x304   :  { %v898_v55 = vpop.eup %897 }
 0x305   :  { %v643_v49 = vmul.f32 0.6931472, %v898_v55  ;;  %v689_v33 = vpop.xlane.xlu2 %688 }
 0x306   :  { %v709_v48 = vsub.f32 %v645_v11, %v689_v33 }
 0x307   :  { %v647_v15 = vadd.f32 %v643_v49, %v1247_v45  ;;  %v563_v45 = vstv %s501_s29 }
 0x308   :  { %v713_v0 = vmul.f32 %v816_v43, %v709_v48  ;;  %899 = vrcp.f32 %v563_v45  ;;  %vm569_vm5 = vweird.f32 %v563_v45  ;;  %v575_v13 = vand.u32 2147483648, %v563_v45 }
 0x309   :  { %v711_v19 = vsub.f32 %v647_v15, %v695_v16  ;;  %v573_v34 = vand.u32 2147483647, %v563_v45 }
 0x30a   :  { %v717_v20 = vsel %vm484_vm14, %v713_v0, 0.0  ;;  %v576_v37 = vor.u32 1.1754944e-38, %v575_v13 }
 0x30b   :  { %v715_v21 = vmul.f32 %v818_v1, %v711_v19  ;;  %v718_v17 = vadd.f32 %v717_v20, %v716_v10  ;;  %vm574_vm7 = vcmp.eq.f32.partialorder %v573_v34, 8.507059e+37 }
 0x30d   :  { %v720_v4 = vadd.f32 %v719_v54, %v718_v17  ;;  %v721_v29 = vsel %vm484_vm14, %v715_v21, 0.0 }
 0x30e   :  { %v900_v22 = vpop.eup %899 }
 0x30f   :  { %v722_v8 = vadd.f32 %v721_v29, %v720_v4  ;;  %v565_v23 = vmul.f32 %v900_v22, %v563_v45  ;;  %vm570_vm6 = vweird.f32 %v900_v22 }
 0x310   :  { %vm571_vm14 = vmor %vm569_vm5, %vm570_vm6 }
 0x311   :  { %723 = vadd.xlane.f32.xlu1 %v722_v8  ;;  %v566_v24 = vsub.f32 1.0, %v565_v23 }
 0x313   :  { %v567_v28 = vmul.f32 %v900_v22, %v566_v24 }
 0x315   :  { %v568_v31 = vadd.f32 %v900_v22, %v567_v28 }
 0x317   :  { %v572_v38 = vsel %vm571_vm14, %v900_v22, %v568_v31 }
 0x318   :  { %v577_v40 = vsel %vm574_vm7, %v576_v37, %v572_v38 }
 0x34f   :  { %v555_v26 = vpop.xlane.xlu2 %554 }
 0x350   :  { %v556_v27 = vrot.slane %v555_v26, 4 }
 0x352   :  { %v557_v9 = vadd.f32 %v556_v27, %v555_v26 }
 0x354   :  { %v558_v30 = vrot.slane %v557_v9, 2 }
 0x356   :  { %v559_v35 = vadd.f32 %v558_v30, %v557_v9 }
 0x357   :  { %v740_v41 = vpop.xlane.xlu2 %739 }
 0x358   :  { %v560_v36 = vrot.slane %v559_v35, 1  ;;  %v741_v42 = vrot.slane %v740_v41, 4 }
 0x35a   :  { %v561_v39 = vadd.f32 %v560_v36, %v559_v35  ;;  %v742_v25 = vadd.f32 %v741_v42, %v740_v41 }
 0x35c   :  { %841 = vpush %v561_v39  ;;  %v743_v43 = vrot.slane %v742_v25, 2 }
 0x35d   :  { %843 = vpush %v577_v40 }
 0x35e   :  { %v744_v50 = vadd.f32 %v743_v43, %v742_v25 }
 0x360   :  { %v745_v52 = vrot.slane %v744_v50, 1 }
 0x362   :  { %v746_v32 = vadd.f32 %v745_v52, %v744_v50 }
 0x384   :  { %v724_v46 = vpop.xlane.xlu1 %723 }
 0x385   :  { %v725_v47 = vrot.slane %v724_v46, 4 }
 0x387   :  { %v726_v44 = vadd.f32 %v725_v47, %v724_v46 }
 0x389   :  { %v727_v1 = vrot.slane %v726_v44, 2 }
 0x38b   :  { %v728_v51 = vadd.f32 %v727_v1, %v726_v44 }
 0x38d   :  { %s842_s30 = spop %841  ;;  %v729_v53 = vrot.slane %v728_v51, 1 }
 0x38e   :  { %s844_s13 = spop %843 }
 0x38f   :  { %s579_s14 = smul.f32 %s844_s13, %s842_s30  ;;  %v730_v6 = vadd.f32 %v729_v53, %v728_v51 }
 0x391   :  { %581 = sst [smem:[#allocation2 + $0x2]] %s579_s14  ;;  %845 = vpush %v730_v6 }
 0x392   :  { %847 = vpush %v746_v32 }
 0x3c2   :  { %s846_s8 = spop %845 }
 0x3c3   :  { %s848_s15 = spop %847 }
 0x3c4   :  { %s748_s7 = smax.f32 %s919_s11, %s848_s15  ;;  %s773_s11 = sshll.u32 %s1341_s12, 4  ;;  %s774_s11 = int_to_ptr.vmem [resolvable:$true] %s773_s11 }
 0x3c5   :  { %v749_v56 = vstv %s748_s7 }
 0x3c6   :  { %901 = vrcp.f32 %v749_v56  ;;  %v761_v57 = vand.u32 2147483648, %v749_v56  ;;  %v759_v61 = vand.u32 2147483647, %v749_v56  ;;  %vm755_vm9 = vweird.f32 %v749_v56 }
 0x3c8   :  { %v762_v12 = vor.u32 1.1754944e-38, %v761_v57  ;;  %vm760_vm11 = vcmp.eq.f32.partialorder %v759_v61, 8.507059e+37 }
 0x3cc   :  { %v902_v58 = vpop.eup %901 }
 0x3cd   :  { %v751_v59 = vmul.f32 %v902_v58, %v749_v56  ;;  %vm756_vm8 = vweird.f32 %v902_v58 }
 0x3ce   :  { %vm757_vm10 = vmor %vm755_vm9, %vm756_vm8 }
 0x3cf   :  { %v752_v60 = vsub.f32 1.0, %v751_v59 }
 0x3d1   :  { %v753_v5 = vmul.f32 %v902_v58, %v752_v60 }
 0x3d3   :  { %v754_v62 = vadd.f32 %v902_v58, %v753_v5 }
 0x3d5   :  { %v758_v63 = vsel %vm757_vm10, %v902_v58, %v754_v62 }
 0x3d6   :  { %v763_v2 = vsel %vm760_vm11, %v762_v12, %v758_v63 }
 0x3d7   :  { %849 = vpush %v763_v2 }
 0x408   :  { %s850_s4 = spop %849 }
 0x409   :  { %s765_s17 = smul.f32 %s850_s4, %s846_s8 }
 0x40b   :  { %767 = sst [smem:[#allocation2 + $0x3]] %s765_s17 }
 0x40c   :  { %776 = dma.smem_to_vmem %s925_s18, 16, %s774_s11, [#allocation3]  }
 0x40d   :  { %915 = dma.done.wait [#allocation3], 16  }
 0x40e   :  { %916 = vsyncadd [#allocation3], 4294967280 }
 0x40f   :  { %781 = sfence }
 0x410   :  { %782 = vsyncpa [#allocation3], 1 }

</bundles_post_ra>
